<compile_context>
chip_gen: v7x
topology: tpu7x:2x2x1
jax: 0.10.0
libtpu: 0.0.40
codegen_flags: <defaults>
</compile_context>

<pallas_src>
import jax
import jax.numpy as jnp
from jax.experimental import pallas as pl
from jax.experimental.pallas import tpu as pltpu


def local_integration_kernel(x_ref, w1_ref, b1_ref, dw_ref, bdw_ref,
                             w2_ref, b2_ref, out_ref, yp_ref):
    """One batch element, NCHW.

    x_ref  : (1, C, H, W) VMEM   input block
    w1_ref : (C*?)  SMEM (M, C)  first 1x1 conv weight, BN scale folded in
    b1_ref : SMEM (M,)           first 1x1 conv bias, BN folded in
    dw_ref : SMEM (M, 9)         depthwise 3x3 taps (m, ky*3+kx)
    bdw_ref: SMEM (M,)           depthwise conv bias
    w2_ref : SMEM (C, M)         second 1x1 conv weight
    b2_ref : SMEM (C,)           second 1x1 conv bias
    out_ref: (1, C, H, W) VMEM   output block
    yp_ref : (M, H+2, W+2) VMEM  scratch: zero-padded post-BN activation
    """
    C = x_ref.shape[1]
    H = x_ref.shape[2]
    W = x_ref.shape[3]
    M = yp_ref.shape[0]

    # Zero the padded scratch so the depthwise conv sees PyTorch's zero
    # padding (interior is overwritten below; only the 1-px halo must be 0,
    # zeroing the whole thing is a few vector stores).
    yp_ref[...] = jnp.zeros_like(yp_ref)

    # Hoist the per-input-channel plane loads (used M times each).
    xs = [x_ref[0, c].astype(jnp.float32) for c in range(C)]       # (H, W)

    # ---- 1x1 conv (C -> M) + folded BatchNorm: unrolled VPU FMAs, write the
    # result straight into the interior of the padded scratch.
    for m in range(M):
        acc = jnp.full((H, W), b1_ref[m], dtype=jnp.float32)
        for c in range(C):
            acc = acc + xs[c] * w1_ref[m, c]
        yp_ref[m, 1:H + 1, 1:W + 1] = acc

    # ---- Depthwise 3x3 conv + bias + ReLU.  The 9 shifted windows are
    # static offset loads from the VMEM scratch (no jnp-value relayouts);
    # one partial accumulator per dy exposes ILP across the VALU slots.
    relu_planes = []
    for m in range(M):
        parts = []
        for dy in range(3):
            p = yp_ref[m, dy:dy + H, 0:W] * dw_ref[m, dy * 3 + 0]
            p = p + yp_ref[m, dy:dy + H, 1:W + 1] * dw_ref[m, dy * 3 + 1]
            p = p + yp_ref[m, dy:dy + H, 2:W + 2] * dw_ref[m, dy * 3 + 2]
            parts.append(p)
        d = parts[0] + parts[1] + parts[2] + bdw_ref[m]
        relu_planes.append(jnp.maximum(d, 0.0))

    # ---- 1x1 conv (M -> C): unrolled VPU FMAs, store per output channel.
    for c in range(C):
        o = jnp.full((H, W), b2_ref[c], dtype=jnp.float32)
        for m in range(M):
            o = o + relu_planes[m] * w2_ref[c, m]
        out_ref[0, c] = o.astype(out_ref.dtype)


def local_integration(x, w1, b1, gamma, beta, mean, var, eps,
                      dw_w, dw_b, w2, b2):
    """x: (N, C, H, W) NCHW.  PyTorch parameter shapes:
       w1 (M,C,1,1), b1 (M,), BN gamma/beta/mean/var (M,),
       dw_w (M,1,3,3), dw_b (M,), w2 (C,M,1,1), b2 (C,)."""
    N, C, H, W = x.shape
    M = w1.shape[0]

    # Fold eval-mode BatchNorm into the first 1x1 conv (exact for inference).
    s = gamma / jnp.sqrt(var + eps)                                   # (M,)
    w1f = (w1.reshape(M, C) * s[:, None]).astype(jnp.float32)         # (M, C)
    b1f = (b1 * s + beta - mean * s).astype(jnp.float32)              # (M,)

    dwf = dw_w.reshape(M, 9).astype(jnp.float32)                      # (M, 9)
    bdwf = dw_b.astype(jnp.float32)                                   # (M,)
    w2f = w2.reshape(C, M).astype(jnp.float32)                        # (C, M)
    b2f = b2.astype(jnp.float32)                                      # (C,)

    smem = pl.BlockSpec(memory_space=pltpu.MemorySpace.SMEM)

    out = pl.pallas_call(
        local_integration_kernel,
        out_shape=jax.ShapeDtypeStruct((N, C, H, W), x.dtype),
        grid_spec=pltpu.PrefetchScalarGridSpec(
            num_scalar_prefetch=0,
            grid=(N,),
            in_specs=[
                pl.BlockSpec((1, C, H, W), lambda n: (n, 0, 0, 0)),
                smem,   # fused conv1 weight (M, C)
                smem,   # fused conv1 bias   (M,)
                smem,   # depthwise taps     (M, 9)
                smem,   # depthwise bias     (M,)
                smem,   # conv2 weight       (C, M)
                smem,   # conv2 bias         (C,)
            ],
            out_specs=pl.BlockSpec((1, C, H, W), lambda n: (n, 0, 0, 0)),
            scratch_shapes=[pltpu.VMEM((M, H + 2, W + 2), jnp.float32)],
        ),
        compiler_params=pltpu.CompilerParams(
            dimension_semantics=("parallel",)),
    )(x, w1f, b1f, dwf, bdwf, w2f, b2f)

    return out


def ref_forward(x, w1, b1, gamma, beta, mean, var, eps, dw_w, dw_b, w2, b2):
    """Pure-JAX reference with the same math, NCHW (matches PyTorch eval)."""
    N, C, H, W = x.shape
    M = w1.shape[0]
    y1 = jnp.einsum('nchw,mc->nmhw', x, w1.reshape(M, C)) \
        + b1[None, :, None, None]
    s = gamma / jnp.sqrt(var + eps)
    y2 = (y1 - mean[None, :, None, None]) * s[None, :, None, None] \
        + beta[None, :, None, None]
    yp = jnp.pad(y2, ((0, 0), (0, 0), (1, 1), (1, 1)))
    w = dw_w.reshape(M, 3, 3)
    acc = jnp.zeros((N, M, H, W), jnp.float32)
    for dy in range(3):
        for dx in range(3):
            acc = acc + yp[:, :, dy:dy + H, dx:dx + W] \
                * w[None, :, dy, dx, None, None]
    y3 = jnp.maximum(acc + dw_b[None, :, None, None], 0.0)
    out = jnp.einsum('nmhw,cm->nchw', y3, w2.reshape(C, M)) \
        + b2[None, :, None, None]
    return out.astype(x.dtype)


if __name__ == "__main__":
    N, C, H, W = 2, 4, 16, 16
    ratio = 1
    M = round(ratio * C)

    key = jax.random.PRNGKey(0)
    keys = jax.random.split(key, 11)

    x = jax.random.normal(keys[0], (N, C, H, W), dtype=jnp.float32)

    # Conv2d(C, M, 1): weight (M, C, 1, 1), bias (M,)
    w1 = jax.random.normal(keys[1], (M, C, 1, 1), jnp.float32) * 0.3
    b1 = jax.random.normal(keys[2], (M,), jnp.float32) * 0.1
    # BatchNorm2d(M), eval mode with non-trivial stats/affine
    gamma = 1.0 + 0.1 * jax.random.normal(keys[3], (M,), jnp.float32)
    beta = 0.1 * jax.random.normal(keys[4], (M,), jnp.float32)
    mean = 0.1 * jax.random.normal(keys[5], (M,), jnp.float32)
    var = 0.5 + jnp.abs(jax.random.normal(keys[6], (M,), jnp.float32)) * 0.5
    eps = 1e-5
    # Conv2d(M, M, 3, padding=1, groups=M): weight (M, 1, 3, 3), bias (M,)
    dw_w = jax.random.normal(keys[7], (M, 1, 3, 3), jnp.float32) * 0.2
    dw_b = jax.random.normal(keys[8], (M,), jnp.float32) * 0.1
    # Conv2d(M, C, 1): weight (C, M, 1, 1), bias (C,)
    w2 = jax.random.normal(keys[9], (C, M, 1, 1), jnp.float32) * 0.3
    b2 = jax.random.normal(keys[10], (C,), jnp.float32) * 0.1

    out = local_integration(x, w1, b1, gamma, beta, mean, var, eps,
                            dw_w, dw_b, w2, b2)
    out = jax.block_until_ready(out)

    ref = ref_forward(x, w1, b1, gamma, beta, mean, var, eps,
                      dw_w, dw_b, w2, b2)
    assert out.shape == (N, C, H, W)
    err = float(jnp.max(jnp.abs(out - ref)))
    assert err < 1e-4, err

    print("KERNEL_OK")
</pallas_src>

<mosaic_0001>
module attributes {stable_mosaic.version = 11 : i64} {
  func.func @local_integration_kernel(%arg0: i32, %arg1: memref<1x4x16x16xf32, #tpu.memory_space<vmem>>, %arg2: memref<4x4xf32, #tpu.memory_space<smem>>, %arg3: memref<4xf32, #tpu.memory_space<smem>>, %arg4: memref<4x9xf32, #tpu.memory_space<smem>>, %arg5: memref<4xf32, #tpu.memory_space<smem>>, %arg6: memref<4x4xf32, #tpu.memory_space<smem>>, %arg7: memref<4xf32, #tpu.memory_space<smem>>, %arg8: memref<1x4x16x16xf32, #tpu.memory_space<vmem>>, %arg9: memref<4x18x18xf32, #tpu.memory_space<vmem>>) attributes {dimension_semantics = [#tpu.dimension_semantics<parallel>], iteration_bounds = array<i64: 2>, scalar_prefetch = 0 : i64, scratch_operands = 1 : i64, tpu.core_type = #tpu.core_type<tc>, window_params = [{transform_indices = @transform_0, window_bounds = array<i64: 1, 4, 16, 16>}, {transform_indices = @transform_1, window_bounds = array<i64: 4, 4>}, {transform_indices = @transform_2, window_bounds = array<i64: 4>}, {transform_indices = @transform_3, window_bounds = array<i64: 4, 9>}, {transform_indices = @transform_4, window_bounds = array<i64: 4>}, {transform_indices = @transform_5, window_bounds = array<i64: 4, 4>}, {transform_indices = @transform_6, window_bounds = array<i64: 4>}, {transform_indices = @transform_7, window_bounds = array<i64: 1, 4, 16, 16>}]} {
    %cst = arith.constant 0.000000e+00 : f32
    %0 = vector.broadcast %cst : f32 to vector<4x18x18xf32>
    %c0 = arith.constant 0 : index
    %c0_0 = arith.constant 0 : index
    %c0_1 = arith.constant 0 : index
    %1 = vector.load %arg9[%c0, %c0_0, %c0_1] : memref<4x18x18xf32, #tpu.memory_space<vmem>>, vector<4x18x18xf32>
    tpu.vector_store %arg9[%c0, %c0_0, %c0_1], %0 {strides = array<i32>} : memref<4x18x18xf32, #tpu.memory_space<vmem>>, vector<4x18x18xf32>,
    %c0_2 = arith.constant 0 : index
    %c0_3 = arith.constant 0 : index
    %c0_4 = arith.constant 0 : index
    %c0_5 = arith.constant 0 : index
    %2 = vector.load %arg1[%c0_2, %c0_3, %c0_4, %c0_5] : memref<1x4x16x16xf32, #tpu.memory_space<vmem>>, vector<1x1x16x16xf32>
    %3 = vector.shape_cast %2 : vector<1x1x16x16xf32> to vector<16x16xf32>
    %c0_6 = arith.constant 0 : index
    %c1 = arith.constant 1 : index
    %c0_7 = arith.constant 0 : index
    %c0_8 = arith.constant 0 : index
    %4 = vector.load %arg1[%c0_6, %c1, %c0_7, %c0_8] : memref<1x4x16x16xf32, #tpu.memory_space<vmem>>, vector<1x1x16x16xf32>
    %5 = vector.shape_cast %4 : vector<1x1x16x16xf32> to vector<16x16xf32>
    %c0_9 = arith.constant 0 : index
    %c2 = arith.constant 2 : index
    %c0_10 = arith.constant 0 : index
    %c0_11 = arith.constant 0 : index
    %6 = vector.load %arg1[%c0_9, %c2, %c0_10, %c0_11] : memref<1x4x16x16xf32, #tpu.memory_space<vmem>>, vector<1x1x16x16xf32>
    %7 = vector.shape_cast %6 : vector<1x1x16x16xf32> to vector<16x16xf32>
    %c0_12 = arith.constant 0 : index
    %c3 = arith.constant 3 : index
    %c0_13 = arith.constant 0 : index
    %c0_14 = arith.constant 0 : index
    %8 = vector.load %arg1[%c0_12, %c3, %c0_13, %c0_14] : memref<1x4x16x16xf32, #tpu.memory_space<vmem>>, vector<1x1x16x16xf32>
    %9 = vector.shape_cast %8 : vector<1x1x16x16xf32> to vector<16x16xf32>
    %c0_15 = arith.constant 0 : index
    %10 = memref.load %arg3[%c0_15] : memref<4xf32, #tpu.memory_space<smem>>
    %11 = vector.broadcast %10 : f32 to vector<16x16xf32>
    %c0_16 = arith.constant 0 : index
    %c0_17 = arith.constant 0 : index
    %12 = memref.load %arg2[%c0_16, %c0_17] : memref<4x4xf32, #tpu.memory_space<smem>>
    %13 = vector.broadcast %12 : f32 to vector<16x16xf32>
    %14 = arith.mulf %3, %13 : vector<16x16xf32>
    %15 = arith.addf %11, %14 : vector<16x16xf32>
    %c0_18 = arith.constant 0 : index
    %c1_19 = arith.constant 1 : index
    %16 = memref.load %arg2[%c0_18, %c1_19] : memref<4x4xf32, #tpu.memory_space<smem>>
    %17 = vector.broadcast %16 : f32 to vector<16x16xf32>
    %18 = arith.mulf %5, %17 : vector<16x16xf32>
    %19 = arith.addf %15, %18 : vector<16x16xf32>
    %c0_20 = arith.constant 0 : index
    %c2_21 = arith.constant 2 : index
    %20 = memref.load %arg2[%c0_20, %c2_21] : memref<4x4xf32, #tpu.memory_space<smem>>
    %21 = vector.broadcast %20 : f32 to vector<16x16xf32>
    %22 = arith.mulf %7, %21 : vector<16x16xf32>
    %23 = arith.addf %19, %22 : vector<16x16xf32>
    %c0_22 = arith.constant 0 : index
    %c3_23 = arith.constant 3 : index
    %24 = memref.load %arg2[%c0_22, %c3_23] : memref<4x4xf32, #tpu.memory_space<smem>>
    %25 = vector.broadcast %24 : f32 to vector<16x16xf32>
    %26 = arith.mulf %9, %25 : vector<16x16xf32>
    %27 = arith.addf %23, %26 : vector<16x16xf32>
    %c0_24 = arith.constant 0 : index
    %c1_25 = arith.constant 1 : index
    %c1_26 = arith.constant 1 : index
    %28 = vector.load %arg9[%c0_24, %c1_25, %c1_26] : memref<4x18x18xf32, #tpu.memory_space<vmem>>, vector<1x16x16xf32>
    %29 = vector.shape_cast %28 : vector<1x16x16xf32> to vector<16x16xf32>
    %30 = vector.shape_cast %27 : vector<16x16xf32> to vector<1x16x16xf32>
    tpu.vector_store %arg9[%c0_24, %c1_25, %c1_26], %30 {strides = array<i32>} : memref<4x18x18xf32, #tpu.memory_space<vmem>>, vector<1x16x16xf32>,
    %c1_27 = arith.constant 1 : index
    %31 = memref.load %arg3[%c1_27] : memref<4xf32, #tpu.memory_space<smem>>
    %32 = vector.broadcast %31 : f32 to vector<16x16xf32>
    %c1_28 = arith.constant 1 : index
    %c0_29 = arith.constant 0 : index
    %33 = memref.load %arg2[%c1_28, %c0_29] : memref<4x4xf32, #tpu.memory_space<smem>>
    %34 = vector.broadcast %33 : f32 to vector<16x16xf32>
    %35 = arith.mulf %3, %34 : vector<16x16xf32>
    %36 = arith.addf %32, %35 : vector<16x16xf32>
    %c1_30 = arith.constant 1 : index
    %c1_31 = arith.constant 1 : index
    %37 = memref.load %arg2[%c1_30, %c1_31] : memref<4x4xf32, #tpu.memory_space<smem>>
    %38 = vector.broadcast %37 : f32 to vector<16x16xf32>
    %39 = arith.mulf %5, %38 : vector<16x16xf32>
    %40 = arith.addf %36, %39 : vector<16x16xf32>
    %c1_32 = arith.constant 1 : index
    %c2_33 = arith.constant 2 : index
    %41 = memref.load %arg2[%c1_32, %c2_33] : memref<4x4xf32, #tpu.memory_space<smem>>
    %42 = vector.broadcast %41 : f32 to vector<16x16xf32>
    %43 = arith.mulf %7, %42 : vector<16x16xf32>
    %44 = arith.addf %40, %43 : vector<16x16xf32>
    %c1_34 = arith.constant 1 : index
    %c3_35 = arith.constant 3 : index
    %45 = memref.load %arg2[%c1_34, %c3_35] : memref<4x4xf32, #tpu.memory_space<smem>>
    %46 = vector.broadcast %45 : f32 to vector<16x16xf32>
    %47 = arith.mulf %9, %46 : vector<16x16xf32>
    %48 = arith.addf %44, %47 : vector<16x16xf32>
    %c1_36 = arith.constant 1 : index
    %c1_37 = arith.constant 1 : index
    %c1_38 = arith.constant 1 : index
    %49 = vector.load %arg9[%c1_36, %c1_37, %c1_38] : memref<4x18x18xf32, #tpu.memory_space<vmem>>, vector<1x16x16xf32>
    %50 = vector.shape_cast %49 : vector<1x16x16xf32> to vector<16x16xf32>
    %51 = vector.shape_cast %48 : vector<16x16xf32> to vector<1x16x16xf32>
    tpu.vector_store %arg9[%c1_36, %c1_37, %c1_38], %51 {strides = array<i32>} : memref<4x18x18xf32, #tpu.memory_space<vmem>>, vector<1x16x16xf32>,
    %c2_39 = arith.constant 2 : index
    %52 = memref.load %arg3[%c2_39] : memref<4xf32, #tpu.memory_space<smem>>
    %53 = vector.broadcast %52 : f32 to vector<16x16xf32>
    %c2_40 = arith.constant 2 : index
    %c0_41 = arith.constant 0 : index
    %54 = memref.load %arg2[%c2_40, %c0_41] : memref<4x4xf32, #tpu.memory_space<smem>>
    %55 = vector.broadcast %54 : f32 to vector<16x16xf32>
    %56 = arith.mulf %3, %55 : vector<16x16xf32>
    %57 = arith.addf %53, %56 : vector<16x16xf32>
    %c2_42 = arith.constant 2 : index
    %c1_43 = arith.constant 1 : index
    %58 = memref.load %arg2[%c2_42, %c1_43] : memref<4x4xf32, #tpu.memory_space<smem>>
    %59 = vector.broadcast %58 : f32 to vector<16x16xf32>
    %60 = arith.mulf %5, %59 : vector<16x16xf32>
    %61 = arith.addf %57, %60 : vector<16x16xf32>
    %c2_44 = arith.constant 2 : index
    %c2_45 = arith.constant 2 : index
    %62 = memref.load %arg2[%c2_44, %c2_45] : memref<4x4xf32, #tpu.memory_space<smem>>
    %63 = vector.broadcast %62 : f32 to vector<16x16xf32>
    %64 = arith.mulf %7, %63 : vector<16x16xf32>
    %65 = arith.addf %61, %64 : vector<16x16xf32>
    %c2_46 = arith.constant 2 : index
    %c3_47 = arith.constant 3 : index
    %66 = memref.load %arg2[%c2_46, %c3_47] : memref<4x4xf32, #tpu.memory_space<smem>>
    %67 = vector.broadcast %66 : f32 to vector<16x16xf32>
    %68 = arith.mulf %9, %67 : vector<16x16xf32>
    %69 = arith.addf %65, %68 : vector<16x16xf32>
    %c2_48 = arith.constant 2 : index
    %c1_49 = arith.constant 1 : index
    %c1_50 = arith.constant 1 : index
    %70 = vector.load %arg9[%c2_48, %c1_49, %c1_50] : memref<4x18x18xf32, #tpu.memory_space<vmem>>, vector<1x16x16xf32>
    %71 = vector.shape_cast %70 : vector<1x16x16xf32> to vector<16x16xf32>
    %72 = vector.shape_cast %69 : vector<16x16xf32> to vector<1x16x16xf32>
    tpu.vector_store %arg9[%c2_48, %c1_49, %c1_50], %72 {strides = array<i32>} : memref<4x18x18xf32, #tpu.memory_space<vmem>>, vector<1x16x16xf32>,
    %c3_51 = arith.constant 3 : index
    %73 = memref.load %arg3[%c3_51] : memref<4xf32, #tpu.memory_space<smem>>
    %74 = vector.broadcast %73 : f32 to vector<16x16xf32>
    %c3_52 = arith.constant 3 : index
    %c0_53 = arith.constant 0 : index
    %75 = memref.load %arg2[%c3_52, %c0_53] : memref<4x4xf32, #tpu.memory_space<smem>>
    %76 = vector.broadcast %75 : f32 to vector<16x16xf32>
    %77 = arith.mulf %3, %76 : vector<16x16xf32>
    %78 = arith.addf %74, %77 : vector<16x16xf32>
    %c3_54 = arith.constant 3 : index
    %c1_55 = arith.constant 1 : index
    %79 = memref.load %arg2[%c3_54, %c1_55] : memref<4x4xf32, #tpu.memory_space<smem>>
    %80 = vector.broadcast %79 : f32 to vector<16x16xf32>
    %81 = arith.mulf %5, %80 : vector<16x16xf32>
    %82 = arith.addf %78, %81 : vector<16x16xf32>
    %c3_56 = arith.constant 3 : index
    %c2_57 = arith.constant 2 : index
    %83 = memref.load %arg2[%c3_56, %c2_57] : memref<4x4xf32, #tpu.memory_space<smem>>
    %84 = vector.broadcast %83 : f32 to vector<16x16xf32>
    %85 = arith.mulf %7, %84 : vector<16x16xf32>
    %86 = arith.addf %82, %85 : vector<16x16xf32>
    %c3_58 = arith.constant 3 : index
    %c3_59 = arith.constant 3 : index
    %87 = memref.load %arg2[%c3_58, %c3_59] : memref<4x4xf32, #tpu.memory_space<smem>>
    %88 = vector.broadcast %87 : f32 to vector<16x16xf32>
    %89 = arith.mulf %9, %88 : vector<16x16xf32>
    %90 = arith.addf %86, %89 : vector<16x16xf32>
    %c3_60 = arith.constant 3 : index
    %c1_61 = arith.constant 1 : index
    %c1_62 = arith.constant 1 : index
    %91 = vector.load %arg9[%c3_60, %c1_61, %c1_62] : memref<4x18x18xf32, #tpu.memory_space<vmem>>, vector<1x16x16xf32>
    %92 = vector.shape_cast %91 : vector<1x16x16xf32> to vector<16x16xf32>
    %93 = vector.shape_cast %90 : vector<16x16xf32> to vector<1x16x16xf32>
    tpu.vector_store %arg9[%c3_60, %c1_61, %c1_62], %93 {strides = array<i32>} : memref<4x18x18xf32, #tpu.memory_space<vmem>>, vector<1x16x16xf32>,
    %c0_63 = arith.constant 0 : index
    %c0_64 = arith.constant 0 : index
    %c0_65 = arith.constant 0 : index
    %94 = vector.load %arg9[%c0_63, %c0_64, %c0_65] : memref<4x18x18xf32, #tpu.memory_space<vmem>>, vector<1x16x16xf32>
    %95 = vector.shape_cast %94 : vector<1x16x16xf32> to vector<16x16xf32>
    %c0_66 = arith.constant 0 : index
    %c0_67 = arith.constant 0 : index
    %96 = memref.load %arg4[%c0_66, %c0_67] : memref<4x9xf32, #tpu.memory_space<smem>>
    %97 = vector.broadcast %96 : f32 to vector<16x16xf32>
    %98 = arith.mulf %95, %97 : vector<16x16xf32>
    %c0_68 = arith.constant 0 : index
    %c0_69 = arith.constant 0 : index
    %c1_70 = arith.constant 1 : index
    %99 = vector.load %arg9[%c0_68, %c0_69, %c1_70] : memref<4x18x18xf32, #tpu.memory_space<vmem>>, vector<1x16x16xf32>
    %100 = vector.shape_cast %99 : vector<1x16x16xf32> to vector<16x16xf32>
    %c0_71 = arith.constant 0 : index
    %c1_72 = arith.constant 1 : index
    %101 = memref.load %arg4[%c0_71, %c1_72] : memref<4x9xf32, #tpu.memory_space<smem>>
    %102 = vector.broadcast %101 : f32 to vector<16x16xf32>
    %103 = arith.mulf %100, %102 : vector<16x16xf32>
    %104 = arith.addf %98, %103 : vector<16x16xf32>
    %c0_73 = arith.constant 0 : index
    %c0_74 = arith.constant 0 : index
    %c2_75 = arith.constant 2 : index
    %105 = vector.load %arg9[%c0_73, %c0_74, %c2_75] : memref<4x18x18xf32, #tpu.memory_space<vmem>>, vector<1x16x16xf32>
    %106 = vector.shape_cast %105 : vector<1x16x16xf32> to vector<16x16xf32>
    %c0_76 = arith.constant 0 : index
    %c2_77 = arith.constant 2 : index
    %107 = memref.load %arg4[%c0_76, %c2_77] : memref<4x9xf32, #tpu.memory_space<smem>>
    %108 = vector.broadcast %107 : f32 to vector<16x16xf32>
    %109 = arith.mulf %106, %108 : vector<16x16xf32>
    %110 = arith.addf %104, %109 : vector<16x16xf32>
    %c0_78 = arith.constant 0 : index
    %c1_79 = arith.constant 1 : index
    %c0_80 = arith.constant 0 : index
    %111 = vector.load %arg9[%c0_78, %c1_79, %c0_80] : memref<4x18x18xf32, #tpu.memory_space<vmem>>, vector<1x16x16xf32>
    %112 = vector.shape_cast %111 : vector<1x16x16xf32> to vector<16x16xf32>
    %c0_81 = arith.constant 0 : index
    %c3_82 = arith.constant 3 : index
    %113 = memref.load %arg4[%c0_81, %c3_82] : memref<4x9xf32, #tpu.memory_space<smem>>
    %114 = vector.broadcast %113 : f32 to vector<16x16xf32>
    %115 = arith.mulf %112, %114 : vector<16x16xf32>
    %c0_83 = arith.constant 0 : index
    %c1_84 = arith.constant 1 : index
    %c1_85 = arith.constant 1 : index
    %116 = vector.load %arg9[%c0_83, %c1_84, %c1_85] : memref<4x18x18xf32, #tpu.memory_space<vmem>>, vector<1x16x16xf32>
    %117 = vector.shape_cast %116 : vector<1x16x16xf32> to vector<16x16xf32>
    %c0_86 = arith.constant 0 : index
    %c4 = arith.constant 4 : index
    %118 = memref.load %arg4[%c0_86, %c4] : memref<4x9xf32, #tpu.memory_space<smem>>
    %119 = vector.broadcast %118 : f32 to vector<16x16xf32>
    %120 = arith.mulf %117, %119 : vector<16x16xf32>
    %121 = arith.addf %115, %120 : vector<16x16xf32>
    %c0_87 = arith.constant 0 : index
    %c1_88 = arith.constant 1 : index
    %c2_89 = arith.constant 2 : index
    %122 = vector.load %arg9[%c0_87, %c1_88, %c2_89] : memref<4x18x18xf32, #tpu.memory_space<vmem>>, vector<1x16x16xf32>
    %123 = vector.shape_cast %122 : vector<1x16x16xf32> to vector<16x16xf32>
    %c0_90 = arith.constant 0 : index
    %c5 = arith.constant 5 : index
    %124 = memref.load %arg4[%c0_90, %c5] : memref<4x9xf32, #tpu.memory_space<smem>>
    %125 = vector.broadcast %124 : f32 to vector<16x16xf32>
    %126 = arith.mulf %123, %125 : vector<16x16xf32>
    %127 = arith.addf %121, %126 : vector<16x16xf32>
    %c0_91 = arith.constant 0 : index
    %c2_92 = arith.constant 2 : index
    %c0_93 = arith.constant 0 : index
    %128 = vector.load %arg9[%c0_91, %c2_92, %c0_93] : memref<4x18x18xf32, #tpu.memory_space<vmem>>, vector<1x16x16xf32>
    %129 = vector.shape_cast %128 : vector<1x16x16xf32> to vector<16x16xf32>
    %c0_94 = arith.constant 0 : index
    %c6 = arith.constant 6 : index
    %130 = memref.load %arg4[%c0_94, %c6] : memref<4x9xf32, #tpu.memory_space<smem>>
    %131 = vector.broadcast %130 : f32 to vector<16x16xf32>
    %132 = arith.mulf %129, %131 : vector<16x16xf32>
    %c0_95 = arith.constant 0 : index
    %c2_96 = arith.constant 2 : index
    %c1_97 = arith.constant 1 : index
    %133 = vector.load %arg9[%c0_95, %c2_96, %c1_97] : memref<4x18x18xf32, #tpu.memory_space<vmem>>, vector<1x16x16xf32>
    %134 = vector.shape_cast %133 : vector<1x16x16xf32> to vector<16x16xf32>
    %c0_98 = arith.constant 0 : index
    %c7 = arith.constant 7 : index
    %135 = memref.load %arg4[%c0_98, %c7] : memref<4x9xf32, #tpu.memory_space<smem>>
    %136 = vector.broadcast %135 : f32 to vector<16x16xf32>
    %137 = arith.mulf %134, %136 : vector<16x16xf32>
    %138 = arith.addf %132, %137 : vector<16x16xf32>
    %c0_99 = arith.constant 0 : index
    %c2_100 = arith.constant 2 : index
    %c2_101 = arith.constant 2 : index
    %139 = vector.load %arg9[%c0_99, %c2_100, %c2_101] : memref<4x18x18xf32, #tpu.memory_space<vmem>>, vector<1x16x16xf32>
    %140 = vector.shape_cast %139 : vector<1x16x16xf32> to vector<16x16xf32>
    %c0_102 = arith.constant 0 : index
    %c8 = arith.constant 8 : index
    %141 = memref.load %arg4[%c0_102, %c8] : memref<4x9xf32, #tpu.memory_space<smem>>
    %142 = vector.broadcast %141 : f32 to vector<16x16xf32>
    %143 = arith.mulf %140, %142 : vector<16x16xf32>
    %144 = arith.addf %138, %143 : vector<16x16xf32>
    %145 = arith.addf %110, %127 : vector<16x16xf32>
    %146 = arith.addf %145, %144 : vector<16x16xf32>
    %c0_103 = arith.constant 0 : index
    %147 = memref.load %arg5[%c0_103] : memref<4xf32, #tpu.memory_space<smem>>
    %148 = vector.broadcast %147 : f32 to vector<16x16xf32>
    %149 = arith.addf %146, %148 : vector<16x16xf32>
    %cst_104 = arith.constant 0.000000e+00 : f32
    %150 = vector.broadcast %cst_104 : f32 to vector<16x16xf32>
    %151 = arith.maximumf %149, %150 : vector<16x16xf32>
    %c1_105 = arith.constant 1 : index
    %c0_106 = arith.constant 0 : index
    %c0_107 = arith.constant 0 : index
    %152 = vector.load %arg9[%c1_105, %c0_106, %c0_107] : memref<4x18x18xf32, #tpu.memory_space<vmem>>, vector<1x16x16xf32>
    %153 = vector.shape_cast %152 : vector<1x16x16xf32> to vector<16x16xf32>
    %c1_108 = arith.constant 1 : index
    %c0_109 = arith.constant 0 : index
    %154 = memref.load %arg4[%c1_108, %c0_109] : memref<4x9xf32, #tpu.memory_space<smem>>
    %155 = vector.broadcast %154 : f32 to vector<16x16xf32>
    %156 = arith.mulf %153, %155 : vector<16x16xf32>
    %c1_110 = arith.constant 1 : index
    %c0_111 = arith.constant 0 : index
    %c1_112 = arith.constant 1 : index
    %157 = vector.load %arg9[%c1_110, %c0_111, %c1_112] : memref<4x18x18xf32, #tpu.memory_space<vmem>>, vector<1x16x16xf32>
    %158 = vector.shape_cast %157 : vector<1x16x16xf32> to vector<16x16xf32>
    %c1_113 = arith.constant 1 : index
    %c1_114 = arith.constant 1 : index
    %159 = memref.load %arg4[%c1_113, %c1_114] : memref<4x9xf32, #tpu.memory_space<smem>>
    %160 = vector.broadcast %159 : f32 to vector<16x16xf32>
    %161 = arith.mulf %158, %160 : vector<16x16xf32>
    %162 = arith.addf %156, %161 : vector<16x16xf32>
    %c1_115 = arith.constant 1 : index
    %c0_116 = arith.constant 0 : index
    %c2_117 = arith.constant 2 : index
    %163 = vector.load %arg9[%c1_115, %c0_116, %c2_117] : memref<4x18x18xf32, #tpu.memory_space<vmem>>, vector<1x16x16xf32>
    %164 = vector.shape_cast %163 : vector<1x16x16xf32> to vector<16x16xf32>
    %c1_118 = arith.constant 1 : index
    %c2_119 = arith.constant 2 : index
    %165 = memref.load %arg4[%c1_118, %c2_119] : memref<4x9xf32, #tpu.memory_space<smem>>
    %166 = vector.broadcast %165 : f32 to vector<16x16xf32>
    %167 = arith.mulf %164, %166 : vector<16x16xf32>
    %168 = arith.addf %162, %167 : vector<16x16xf32>
    %c1_120 = arith.constant 1 : index
    %c1_121 = arith.constant 1 : index
    %c0_122 = arith.constant 0 : index
    %169 = vector.load %arg9[%c1_120, %c1_121, %c0_122] : memref<4x18x18xf32, #tpu.memory_space<vmem>>, vector<1x16x16xf32>
    %170 = vector.shape_cast %169 : vector<1x16x16xf32> to vector<16x16xf32>
    %c1_123 = arith.constant 1 : index
    %c3_124 = arith.constant 3 : index
    %171 = memref.load %arg4[%c1_123, %c3_124] : memref<4x9xf32, #tpu.memory_space<smem>>
    %172 = vector.broadcast %171 : f32 to vector<16x16xf32>
    %173 = arith.mulf %170, %172 : vector<16x16xf32>
    %c1_125 = arith.constant 1 : index
    %c1_126 = arith.constant 1 : index
    %c1_127 = arith.constant 1 : index
    %174 = vector.load %arg9[%c1_125, %c1_126, %c1_127] : memref<4x18x18xf32, #tpu.memory_space<vmem>>, vector<1x16x16xf32>
    %175 = vector.shape_cast %174 : vector<1x16x16xf32> to vector<16x16xf32>
    %c1_128 = arith.constant 1 : index
    %c4_129 = arith.constant 4 : index
    %176 = memref.load %arg4[%c1_128, %c4_129] : memref<4x9xf32, #tpu.memory_space<smem>>
    %177 = vector.broadcast %176 : f32 to vector<16x16xf32>
    %178 = arith.mulf %175, %177 : vector<16x16xf32>
    %179 = arith.addf %173, %178 : vector<16x16xf32>
    %c1_130 = arith.constant 1 : index
    %c1_131 = arith.constant 1 : index
    %c2_132 = arith.constant 2 : index
    %180 = vector.load %arg9[%c1_130, %c1_131, %c2_132] : memref<4x18x18xf32, #tpu.memory_space<vmem>>, vector<1x16x16xf32>
    %181 = vector.shape_cast %180 : vector<1x16x16xf32> to vector<16x16xf32>
    %c1_133 = arith.constant 1 : index
    %c5_134 = arith.constant 5 : index
    %182 = memref.load %arg4[%c1_133, %c5_134] : memref<4x9xf32, #tpu.memory_space<smem>>
    %183 = vector.broadcast %182 : f32 to vector<16x16xf32>
    %184 = arith.mulf %181, %183 : vector<16x16xf32>
    %185 = arith.addf %179, %184 : vector<16x16xf32>
    %c1_135 = arith.constant 1 : index
    %c2_136 = arith.constant 2 : index
    %c0_137 = arith.constant 0 : index
    %186 = vector.load %arg9[%c1_135, %c2_136, %c0_137] : memref<4x18x18xf32, #tpu.memory_space<vmem>>, vector<1x16x16xf32>
    %187 = vector.shape_cast %186 : vector<1x16x16xf32> to vector<16x16xf32>
    %c1_138 = arith.constant 1 : index
    %c6_139 = arith.constant 6 : index
    %188 = memref.load %arg4[%c1_138, %c6_139] : memref<4x9xf32, #tpu.memory_space<smem>>
    %189 = vector.broadcast %188 : f32 to vector<16x16xf32>
    %190 = arith.mulf %187, %189 : vector<16x16xf32>
    %c1_140 = arith.constant 1 : index
    %c2_141 = arith.constant 2 : index
    %c1_142 = arith.constant 1 : index
    %191 = vector.load %arg9[%c1_140, %c2_141, %c1_142] : memref<4x18x18xf32, #tpu.memory_space<vmem>>, vector<1x16x16xf32>
    %192 = vector.shape_cast %191 : vector<1x16x16xf32> to vector<16x16xf32>
    %c1_143 = arith.constant 1 : index
    %c7_144 = arith.constant 7 : index
    %193 = memref.load %arg4[%c1_143, %c7_144] : memref<4x9xf32, #tpu.memory_space<smem>>
    %194 = vector.broadcast %193 : f32 to vector<16x16xf32>
    %195 = arith.mulf %192, %194 : vector<16x16xf32>
    %196 = arith.addf %190, %195 : vector<16x16xf32>
    %c1_145 = arith.constant 1 : index
    %c2_146 = arith.constant 2 : index
    %c2_147 = arith.constant 2 : index
    %197 = vector.load %arg9[%c1_145, %c2_146, %c2_147] : memref<4x18x18xf32, #tpu.memory_space<vmem>>, vector<1x16x16xf32>
    %198 = vector.shape_cast %197 : vector<1x16x16xf32> to vector<16x16xf32>
    %c1_148 = arith.constant 1 : index
    %c8_149 = arith.constant 8 : index
    %199 = memref.load %arg4[%c1_148, %c8_149] : memref<4x9xf32, #tpu.memory_space<smem>>
    %200 = vector.broadcast %199 : f32 to vector<16x16xf32>
    %201 = arith.mulf %198, %200 : vector<16x16xf32>
    %202 = arith.addf %196, %201 : vector<16x16xf32>
    %203 = arith.addf %168, %185 : vector<16x16xf32>
    %204 = arith.addf %203, %202 : vector<16x16xf32>
    %c1_150 = arith.constant 1 : index
    %205 = memref.load %arg5[%c1_150] : memref<4xf32, #tpu.memory_space<smem>>
    %206 = vector.broadcast %205 : f32 to vector<16x16xf32>
    %207 = arith.addf %204, %206 : vector<16x16xf32>
    %cst_151 = arith.constant 0.000000e+00 : f32
    %208 = vector.broadcast %cst_151 : f32 to vector<16x16xf32>
    %209 = arith.maximumf %207, %208 : vector<16x16xf32>
    %c2_152 = arith.constant 2 : index
    %c0_153 = arith.constant 0 : index
    %c0_154 = arith.constant 0 : index
    %210 = vector.load %arg9[%c2_152, %c0_153, %c0_154] : memref<4x18x18xf32, #tpu.memory_space<vmem>>, vector<1x16x16xf32>
    %211 = vector.shape_cast %210 : vector<1x16x16xf32> to vector<16x16xf32>
    %c2_155 = arith.constant 2 : index
    %c0_156 = arith.constant 0 : index
    %212 = memref.load %arg4[%c2_155, %c0_156] : memref<4x9xf32, #tpu.memory_space<smem>>
    %213 = vector.broadcast %212 : f32 to vector<16x16xf32>
    %214 = arith.mulf %211, %213 : vector<16x16xf32>
    %c2_157 = arith.constant 2 : index
    %c0_158 = arith.constant 0 : index
    %c1_159 = arith.constant 1 : index
    %215 = vector.load %arg9[%c2_157, %c0_158, %c1_159] : memref<4x18x18xf32, #tpu.memory_space<vmem>>, vector<1x16x16xf32>
    %216 = vector.shape_cast %215 : vector<1x16x16xf32> to vector<16x16xf32>
    %c2_160 = arith.constant 2 : index
    %c1_161 = arith.constant 1 : index
    %217 = memref.load %arg4[%c2_160, %c1_161] : memref<4x9xf32, #tpu.memory_space<smem>>
    %218 = vector.broadcast %217 : f32 to vector<16x16xf32>
    %219 = arith.mulf %216, %218 : vector<16x16xf32>
    %220 = arith.addf %214, %219 : vector<16x16xf32>
    %c2_162 = arith.constant 2 : index
    %c0_163 = arith.constant 0 : index
    %c2_164 = arith.constant 2 : index
    %221 = vector.load %arg9[%c2_162, %c0_163, %c2_164] : memref<4x18x18xf32, #tpu.memory_space<vmem>>, vector<1x16x16xf32>
    %222 = vector.shape_cast %221 : vector<1x16x16xf32> to vector<16x16xf32>
    %c2_165 = arith.constant 2 : index
    %c2_166 = arith.constant 2 : index
    %223 = memref.load %arg4[%c2_165, %c2_166] : memref<4x9xf32, #tpu.memory_space<smem>>
    %224 = vector.broadcast %223 : f32 to vector<16x16xf32>
    %225 = arith.mulf %222, %224 : vector<16x16xf32>
    %226 = arith.addf %220, %225 : vector<16x16xf32>
    %c2_167 = arith.constant 2 : index
    %c1_168 = arith.constant 1 : index
    %c0_169 = arith.constant 0 : index
    %227 = vector.load %arg9[%c2_167, %c1_168, %c0_169] : memref<4x18x18xf32, #tpu.memory_space<vmem>>, vector<1x16x16xf32>
    %228 = vector.shape_cast %227 : vector<1x16x16xf32> to vector<16x16xf32>
    %c2_170 = arith.constant 2 : index
    %c3_171 = arith.constant 3 : index
    %229 = memref.load %arg4[%c2_170, %c3_171] : memref<4x9xf32, #tpu.memory_space<smem>>
    %230 = vector.broadcast %229 : f32 to vector<16x16xf32>
    %231 = arith.mulf %228, %230 : vector<16x16xf32>
    %c2_172 = arith.constant 2 : index
    %c1_173 = arith.constant 1 : index
    %c1_174 = arith.constant 1 : index
    %232 = vector.load %arg9[%c2_172, %c1_173, %c1_174] : memref<4x18x18xf32, #tpu.memory_space<vmem>>, vector<1x16x16xf32>
    %233 = vector.shape_cast %232 : vector<1x16x16xf32> to vector<16x16xf32>
    %c2_175 = arith.constant 2 : index
    %c4_176 = arith.constant 4 : index
    %234 = memref.load %arg4[%c2_175, %c4_176] : memref<4x9xf32, #tpu.memory_space<smem>>
    %235 = vector.broadcast %234 : f32 to vector<16x16xf32>
    %236 = arith.mulf %233, %235 : vector<16x16xf32>
    %237 = arith.addf %231, %236 : vector<16x16xf32>
    %c2_177 = arith.constant 2 : index
    %c1_178 = arith.constant 1 : index
    %c2_179 = arith.constant 2 : index
    %238 = vector.load %arg9[%c2_177, %c1_178, %c2_179] : memref<4x18x18xf32, #tpu.memory_space<vmem>>, vector<1x16x16xf32>
    %239 = vector.shape_cast %238 : vector<1x16x16xf32> to vector<16x16xf32>
    %c2_180 = arith.constant 2 : index
    %c5_181 = arith.constant 5 : index
    %240 = memref.load %arg4[%c2_180, %c5_181] : memref<4x9xf32, #tpu.memory_space<smem>>
    %241 = vector.broadcast %240 : f32 to vector<16x16xf32>
    %242 = arith.mulf %239, %241 : vector<16x16xf32>
    %243 = arith.addf %237, %242 : vector<16x16xf32>
    %c2_182 = arith.constant 2 : index
    %c2_183 = arith.constant 2 : index
    %c0_184 = arith.constant 0 : index
    %244 = vector.load %arg9[%c2_182, %c2_183, %c0_184] : memref<4x18x18xf32, #tpu.memory_space<vmem>>, vector<1x16x16xf32>
    %245 = vector.shape_cast %244 : vector<1x16x16xf32> to vector<16x16xf32>
    %c2_185 = arith.constant 2 : index
    %c6_186 = arith.constant 6 : index
    %246 = memref.load %arg4[%c2_185, %c6_186] : memref<4x9xf32, #tpu.memory_space<smem>>
    %247 = vector.broadcast %246 : f32 to vector<16x16xf32>
    %248 = arith.mulf %245, %247 : vector<16x16xf32>
    %c2_187 = arith.constant 2 : index
    %c2_188 = arith.constant 2 : index
    %c1_189 = arith.constant 1 : index
    %249 = vector.load %arg9[%c2_187, %c2_188, %c1_189] : memref<4x18x18xf32, #tpu.memory_space<vmem>>, vector<1x16x16xf32>
    %250 = vector.shape_cast %249 : vector<1x16x16xf32> to vector<16x16xf32>
    %c2_190 = arith.constant 2 : index
    %c7_191 = arith.constant 7 : index
    %251 = memref.load %arg4[%c2_190, %c7_191] : memref<4x9xf32, #tpu.memory_space<smem>>
    %252 = vector.broadcast %251 : f32 to vector<16x16xf32>
    %253 = arith.mulf %250, %252 : vector<16x16xf32>
    %254 = arith.addf %248, %253 : vector<16x16xf32>
    %c2_192 = arith.constant 2 : index
    %c2_193 = arith.constant 2 : index
    %c2_194 = arith.constant 2 : index
    %255 = vector.load %arg9[%c2_192, %c2_193, %c2_194] : memref<4x18x18xf32, #tpu.memory_space<vmem>>, vector<1x16x16xf32>
    %256 = vector.shape_cast %255 : vector<1x16x16xf32> to vector<16x16xf32>
    %c2_195 = arith.constant 2 : index
    %c8_196 = arith.constant 8 : index
    %257 = memref.load %arg4[%c2_195, %c8_196] : memref<4x9xf32, #tpu.memory_space<smem>>
    %258 = vector.broadcast %257 : f32 to vector<16x16xf32>
    %259 = arith.mulf %256, %258 : vector<16x16xf32>
    %260 = arith.addf %254, %259 : vector<16x16xf32>
    %261 = arith.addf %226, %243 : vector<16x16xf32>
    %262 = arith.addf %261, %260 : vector<16x16xf32>
    %c2_197 = arith.constant 2 : index
    %263 = memref.load %arg5[%c2_197] : memref<4xf32, #tpu.memory_space<smem>>
    %264 = vector.broadcast %263 : f32 to vector<16x16xf32>
    %265 = arith.addf %262, %264 : vector<16x16xf32>
    %cst_198 = arith.constant 0.000000e+00 : f32
    %266 = vector.broadcast %cst_198 : f32 to vector<16x16xf32>
    %267 = arith.maximumf %265, %266 : vector<16x16xf32>
    %c3_199 = arith.constant 3 : index
    %c0_200 = arith.constant 0 : index
    %c0_201 = arith.constant 0 : index
    %268 = vector.load %arg9[%c3_199, %c0_200, %c0_201] : memref<4x18x18xf32, #tpu.memory_space<vmem>>, vector<1x16x16xf32>
    %269 = vector.shape_cast %268 : vector<1x16x16xf32> to vector<16x16xf32>
    %c3_202 = arith.constant 3 : index
    %c0_203 = arith.constant 0 : index
    %270 = memref.load %arg4[%c3_202, %c0_203] : memref<4x9xf32, #tpu.memory_space<smem>>
    %271 = vector.broadcast %270 : f32 to vector<16x16xf32>
    %272 = arith.mulf %269, %271 : vector<16x16xf32>
    %c3_204 = arith.constant 3 : index
    %c0_205 = arith.constant 0 : index
    %c1_206 = arith.constant 1 : index
    %273 = vector.load %arg9[%c3_204, %c0_205, %c1_206] : memref<4x18x18xf32, #tpu.memory_space<vmem>>, vector<1x16x16xf32>
    %274 = vector.shape_cast %273 : vector<1x16x16xf32> to vector<16x16xf32>
    %c3_207 = arith.constant 3 : index
    %c1_208 = arith.constant 1 : index
    %275 = memref.load %arg4[%c3_207, %c1_208] : memref<4x9xf32, #tpu.memory_space<smem>>
    %276 = vector.broadcast %275 : f32 to vector<16x16xf32>
    %277 = arith.mulf %274, %276 : vector<16x16xf32>
    %278 = arith.addf %272, %277 : vector<16x16xf32>
    %c3_209 = arith.constant 3 : index
    %c0_210 = arith.constant 0 : index
    %c2_211 = arith.constant 2 : index
    %279 = vector.load %arg9[%c3_209, %c0_210, %c2_211] : memref<4x18x18xf32, #tpu.memory_space<vmem>>, vector<1x16x16xf32>
    %280 = vector.shape_cast %279 : vector<1x16x16xf32> to vector<16x16xf32>
    %c3_212 = arith.constant 3 : index
    %c2_213 = arith.constant 2 : index
    %281 = memref.load %arg4[%c3_212, %c2_213] : memref<4x9xf32, #tpu.memory_space<smem>>
    %282 = vector.broadcast %281 : f32 to vector<16x16xf32>
    %283 = arith.mulf %280, %282 : vector<16x16xf32>
    %284 = arith.addf %278, %283 : vector<16x16xf32>
    %c3_214 = arith.constant 3 : index
    %c1_215 = arith.constant 1 : index
    %c0_216 = arith.constant 0 : index
    %285 = vector.load %arg9[%c3_214, %c1_215, %c0_216] : memref<4x18x18xf32, #tpu.memory_space<vmem>>, vector<1x16x16xf32>
    %286 = vector.shape_cast %285 : vector<1x16x16xf32> to vector<16x16xf32>
    %c3_217 = arith.constant 3 : index
    %c3_218 = arith.constant 3 : index
    %287 = memref.load %arg4[%c3_217, %c3_218] : memref<4x9xf32, #tpu.memory_space<smem>>
    %288 = vector.broadcast %287 : f32 to vector<16x16xf32>
    %289 = arith.mulf %286, %288 : vector<16x16xf32>
    %c3_219 = arith.constant 3 : index
    %c1_220 = arith.constant 1 : index
    %c1_221 = arith.constant 1 : index
    %290 = vector.load %arg9[%c3_219, %c1_220, %c1_221] : memref<4x18x18xf32, #tpu.memory_space<vmem>>, vector<1x16x16xf32>
    %291 = vector.shape_cast %290 : vector<1x16x16xf32> to vector<16x16xf32>
    %c3_222 = arith.constant 3 : index
    %c4_223 = arith.constant 4 : index
    %292 = memref.load %arg4[%c3_222, %c4_223] : memref<4x9xf32, #tpu.memory_space<smem>>
    %293 = vector.broadcast %292 : f32 to vector<16x16xf32>
    %294 = arith.mulf %291, %293 : vector<16x16xf32>
    %295 = arith.addf %289, %294 : vector<16x16xf32>
    %c3_224 = arith.constant 3 : index
    %c1_225 = arith.constant 1 : index
    %c2_226 = arith.constant 2 : index
    %296 = vector.load %arg9[%c3_224, %c1_225, %c2_226] : memref<4x18x18xf32, #tpu.memory_space<vmem>>, vector<1x16x16xf32>
    %297 = vector.shape_cast %296 : vector<1x16x16xf32> to vector<16x16xf32>
    %c3_227 = arith.constant 3 : index
    %c5_228 = arith.constant 5 : index
    %298 = memref.load %arg4[%c3_227, %c5_228] : memref<4x9xf32, #tpu.memory_space<smem>>
    %299 = vector.broadcast %298 : f32 to vector<16x16xf32>
    %300 = arith.mulf %297, %299 : vector<16x16xf32>
    %301 = arith.addf %295, %300 : vector<16x16xf32>
    %c3_229 = arith.constant 3 : index
    %c2_230 = arith.constant 2 : index
    %c0_231 = arith.constant 0 : index
    %302 = vector.load %arg9[%c3_229, %c2_230, %c0_231] : memref<4x18x18xf32, #tpu.memory_space<vmem>>, vector<1x16x16xf32>
    %303 = vector.shape_cast %302 : vector<1x16x16xf32> to vector<16x16xf32>
    %c3_232 = arith.constant 3 : index
    %c6_233 = arith.constant 6 : index
    %304 = memref.load %arg4[%c3_232, %c6_233] : memref<4x9xf32, #tpu.memory_space<smem>>
    %305 = vector.broadcast %304 : f32 to vector<16x16xf32>
    %306 = arith.mulf %303, %305 : vector<16x16xf32>
    %c3_234 = arith.constant 3 : index
    %c2_235 = arith.constant 2 : index
    %c1_236 = arith.constant 1 : index
    %307 = vector.load %arg9[%c3_234, %c2_235, %c1_236] : memref<4x18x18xf32, #tpu.memory_space<vmem>>, vector<1x16x16xf32>
    %308 = vector.shape_cast %307 : vector<1x16x16xf32> to vector<16x16xf32>
    %c3_237 = arith.constant 3 : index
    %c7_238 = arith.constant 7 : index
    %309 = memref.load %arg4[%c3_237, %c7_238] : memref<4x9xf32, #tpu.memory_space<smem>>
    %310 = vector.broadcast %309 : f32 to vector<16x16xf32>
    %311 = arith.mulf %308, %310 : vector<16x16xf32>
    %312 = arith.addf %306, %311 : vector<16x16xf32>
    %c3_239 = arith.constant 3 : index
    %c2_240 = arith.constant 2 : index
    %c2_241 = arith.constant 2 : index
    %313 = vector.load %arg9[%c3_239, %c2_240, %c2_241] : memref<4x18x18xf32, #tpu.memory_space<vmem>>, vector<1x16x16xf32>
    %314 = vector.shape_cast %313 : vector<1x16x16xf32> to vector<16x16xf32>
    %c3_242 = arith.constant 3 : index
    %c8_243 = arith.constant 8 : index
    %315 = memref.load %arg4[%c3_242, %c8_243] : memref<4x9xf32, #tpu.memory_space<smem>>
    %316 = vector.broadcast %315 : f32 to vector<16x16xf32>
    %317 = arith.mulf %314, %316 : vector<16x16xf32>
    %318 = arith.addf %312, %317 : vector<16x16xf32>
    %319 = arith.addf %284, %301 : vector<16x16xf32>
    %320 = arith.addf %319, %318 : vector<16x16xf32>
    %c3_244 = arith.constant 3 : index
    %321 = memref.load %arg5[%c3_244] : memref<4xf32, #tpu.memory_space<smem>>
    %322 = vector.broadcast %321 : f32 to vector<16x16xf32>
    %323 = arith.addf %320, %322 : vector<16x16xf32>
    %cst_245 = arith.constant 0.000000e+00 : f32
    %324 = vector.broadcast %cst_245 : f32 to vector<16x16xf32>
    %325 = arith.maximumf %323, %324 : vector<16x16xf32>
    %c0_246 = arith.constant 0 : index
    %326 = memref.load %arg7[%c0_246] : memref<4xf32, #tpu.memory_space<smem>>
    %327 = vector.broadcast %326 : f32 to vector<16x16xf32>
    %c0_247 = arith.constant 0 : index
    %c0_248 = arith.constant 0 : index
    %328 = memref.load %arg6[%c0_247, %c0_248] : memref<4x4xf32, #tpu.memory_space<smem>>
    %329 = vector.broadcast %328 : f32 to vector<16x16xf32>
    %330 = arith.mulf %151, %329 : vector<16x16xf32>
    %331 = arith.addf %327, %330 : vector<16x16xf32>
    %c0_249 = arith.constant 0 : index
    %c1_250 = arith.constant 1 : index
    %332 = memref.load %arg6[%c0_249, %c1_250] : memref<4x4xf32, #tpu.memory_space<smem>>
    %333 = vector.broadcast %332 : f32 to vector<16x16xf32>
    %334 = arith.mulf %209, %333 : vector<16x16xf32>
    %335 = arith.addf %331, %334 : vector<16x16xf32>
    %c0_251 = arith.constant 0 : index
    %c2_252 = arith.constant 2 : index
    %336 = memref.load %arg6[%c0_251, %c2_252] : memref<4x4xf32, #tpu.memory_space<smem>>
    %337 = vector.broadcast %336 : f32 to vector<16x16xf32>
    %338 = arith.mulf %267, %337 : vector<16x16xf32>
    %339 = arith.addf %335, %338 : vector<16x16xf32>
    %c0_253 = arith.constant 0 : index
    %c3_254 = arith.constant 3 : index
    %340 = memref.load %arg6[%c0_253, %c3_254] : memref<4x4xf32, #tpu.memory_space<smem>>
    %341 = vector.broadcast %340 : f32 to vector<16x16xf32>
    %342 = arith.mulf %325, %341 : vector<16x16xf32>
    %343 = arith.addf %339, %342 : vector<16x16xf32>
    %c0_255 = arith.constant 0 : index
    %c0_256 = arith.constant 0 : index
    %c0_257 = arith.constant 0 : index
    %c0_258 = arith.constant 0 : index
    %344 = vector.load %arg8[%c0_255, %c0_256, %c0_257, %c0_258] : memref<1x4x16x16xf32, #tpu.memory_space<vmem>>, vector<1x1x16x16xf32>
    %345 = vector.shape_cast %344 : vector<1x1x16x16xf32> to vector<16x16xf32>
    %346 = vector.shape_cast %343 : vector<16x16xf32> to vector<1x1x16x16xf32>
    tpu.vector_store %arg8[%c0_255, %c0_256, %c0_257, %c0_258], %346 {strides = array<i32>} : memref<1x4x16x16xf32, #tpu.memory_space<vmem>>, vector<1x1x16x16xf32>,
    %c1_259 = arith.constant 1 : index
    %347 = memref.load %arg7[%c1_259] : memref<4xf32, #tpu.memory_space<smem>>
    %348 = vector.broadcast %347 : f32 to vector<16x16xf32>
    %c1_260 = arith.constant 1 : index
    %c0_261 = arith.constant 0 : index
    %349 = memref.load %arg6[%c1_260, %c0_261] : memref<4x4xf32, #tpu.memory_space<smem>>
    %350 = vector.broadcast %349 : f32 to vector<16x16xf32>
    %351 = arith.mulf %151, %350 : vector<16x16xf32>
    %352 = arith.addf %348, %351 : vector<16x16xf32>
    %c1_262 = arith.constant 1 : index
    %c1_263 = arith.constant 1 : index
    %353 = memref.load %arg6[%c1_262, %c1_263] : memref<4x4xf32, #tpu.memory_space<smem>>
    %354 = vector.broadcast %353 : f32 to vector<16x16xf32>
    %355 = arith.mulf %209, %354 : vector<16x16xf32>
    %356 = arith.addf %352, %355 : vector<16x16xf32>
    %c1_264 = arith.constant 1 : index
    %c2_265 = arith.constant 2 : index
    %357 = memref.load %arg6[%c1_264, %c2_265] : memref<4x4xf32, #tpu.memory_space<smem>>
    %358 = vector.broadcast %357 : f32 to vector<16x16xf32>
    %359 = arith.mulf %267, %358 : vector<16x16xf32>
    %360 = arith.addf %356, %359 : vector<16x16xf32>
    %c1_266 = arith.constant 1 : index
    %c3_267 = arith.constant 3 : index
    %361 = memref.load %arg6[%c1_266, %c3_267] : memref<4x4xf32, #tpu.memory_space<smem>>
    %362 = vector.broadcast %361 : f32 to vector<16x16xf32>
    %363 = arith.mulf %325, %362 : vector<16x16xf32>
    %364 = arith.addf %360, %363 : vector<16x16xf32>
    %c0_268 = arith.constant 0 : index
    %c1_269 = arith.constant 1 : index
    %c0_270 = arith.constant 0 : index
    %c0_271 = arith.constant 0 : index
    %365 = vector.load %arg8[%c0_268, %c1_269, %c0_270, %c0_271] : memref<1x4x16x16xf32, #tpu.memory_space<vmem>>, vector<1x1x16x16xf32>
    %366 = vector.shape_cast %365 : vector<1x1x16x16xf32> to vector<16x16xf32>
    %367 = vector.shape_cast %364 : vector<16x16xf32> to vector<1x1x16x16xf32>
    tpu.vector_store %arg8[%c0_268, %c1_269, %c0_270, %c0_271], %367 {strides = array<i32>} : memref<1x4x16x16xf32, #tpu.memory_space<vmem>>, vector<1x1x16x16xf32>,
    %c2_272 = arith.constant 2 : index
    %368 = memref.load %arg7[%c2_272] : memref<4xf32, #tpu.memory_space<smem>>
    %369 = vector.broadcast %368 : f32 to vector<16x16xf32>
    %c2_273 = arith.constant 2 : index
    %c0_274 = arith.constant 0 : index
    %370 = memref.load %arg6[%c2_273, %c0_274] : memref<4x4xf32, #tpu.memory_space<smem>>
    %371 = vector.broadcast %370 : f32 to vector<16x16xf32>
    %372 = arith.mulf %151, %371 : vector<16x16xf32>
    %373 = arith.addf %369, %372 : vector<16x16xf32>
    %c2_275 = arith.constant 2 : index
    %c1_276 = arith.constant 1 : index
    %374 = memref.load %arg6[%c2_275, %c1_276] : memref<4x4xf32, #tpu.memory_space<smem>>
    %375 = vector.broadcast %374 : f32 to vector<16x16xf32>
    %376 = arith.mulf %209, %375 : vector<16x16xf32>
    %377 = arith.addf %373, %376 : vector<16x16xf32>
    %c2_277 = arith.constant 2 : index
    %c2_278 = arith.constant 2 : index
    %378 = memref.load %arg6[%c2_277, %c2_278] : memref<4x4xf32, #tpu.memory_space<smem>>
    %379 = vector.broadcast %378 : f32 to vector<16x16xf32>
    %380 = arith.mulf %267, %379 : vector<16x16xf32>
    %381 = arith.addf %377, %380 : vector<16x16xf32>
    %c2_279 = arith.constant 2 : index
    %c3_280 = arith.constant 3 : index
    %382 = memref.load %arg6[%c2_279, %c3_280] : memref<4x4xf32, #tpu.memory_space<smem>>
    %383 = vector.broadcast %382 : f32 to vector<16x16xf32>
    %384 = arith.mulf %325, %383 : vector<16x16xf32>
    %385 = arith.addf %381, %384 : vector<16x16xf32>
    %c0_281 = arith.constant 0 : index
    %c2_282 = arith.constant 2 : index
    %c0_283 = arith.constant 0 : index
    %c0_284 = arith.constant 0 : index
    %386 = vector.load %arg8[%c0_281, %c2_282, %c0_283, %c0_284] : memref<1x4x16x16xf32, #tpu.memory_space<vmem>>, vector<1x1x16x16xf32>
    %387 = vector.shape_cast %386 : vector<1x1x16x16xf32> to vector<16x16xf32>
    %388 = vector.shape_cast %385 : vector<16x16xf32> to vector<1x1x16x16xf32>
    tpu.vector_store %arg8[%c0_281, %c2_282, %c0_283, %c0_284], %388 {strides = array<i32>} : memref<1x4x16x16xf32, #tpu.memory_space<vmem>>, vector<1x1x16x16xf32>,
    %c3_285 = arith.constant 3 : index
    %389 = memref.load %arg7[%c3_285] : memref<4xf32, #tpu.memory_space<smem>>
    %390 = vector.broadcast %389 : f32 to vector<16x16xf32>
    %c3_286 = arith.constant 3 : index
    %c0_287 = arith.constant 0 : index
    %391 = memref.load %arg6[%c3_286, %c0_287] : memref<4x4xf32, #tpu.memory_space<smem>>
    %392 = vector.broadcast %391 : f32 to vector<16x16xf32>
    %393 = arith.mulf %151, %392 : vector<16x16xf32>
    %394 = arith.addf %390, %393 : vector<16x16xf32>
    %c3_288 = arith.constant 3 : index
    %c1_289 = arith.constant 1 : index
    %395 = memref.load %arg6[%c3_288, %c1_289] : memref<4x4xf32, #tpu.memory_space<smem>>
    %396 = vector.broadcast %395 : f32 to vector<16x16xf32>
    %397 = arith.mulf %209, %396 : vector<16x16xf32>
    %398 = arith.addf %394, %397 : vector<16x16xf32>
    %c3_290 = arith.constant 3 : index
    %c2_291 = arith.constant 2 : index
    %399 = memref.load %arg6[%c3_290, %c2_291] : memref<4x4xf32, #tpu.memory_space<smem>>
    %400 = vector.broadcast %399 : f32 to vector<16x16xf32>
    %401 = arith.mulf %267, %400 : vector<16x16xf32>
    %402 = arith.addf %398, %401 : vector<16x16xf32>
    %c3_292 = arith.constant 3 : index
    %c3_293 = arith.constant 3 : index
    %403 = memref.load %arg6[%c3_292, %c3_293] : memref<4x4xf32, #tpu.memory_space<smem>>
    %404 = vector.broadcast %403 : f32 to vector<16x16xf32>
    %405 = arith.mulf %325, %404 : vector<16x16xf32>
    %406 = arith.addf %402, %405 : vector<16x16xf32>
    %c0_294 = arith.constant 0 : index
    %c3_295 = arith.constant 3 : index
    %c0_296 = arith.constant 0 : index
    %c0_297 = arith.constant 0 : index
    %407 = vector.load %arg8[%c0_294, %c3_295, %c0_296, %c0_297] : memref<1x4x16x16xf32, #tpu.memory_space<vmem>>, vector<1x1x16x16xf32>
    %408 = vector.shape_cast %407 : vector<1x1x16x16xf32> to vector<16x16xf32>
    %409 = vector.shape_cast %406 : vector<16x16xf32> to vector<1x1x16x16xf32>
    tpu.vector_store %arg8[%c0_294, %c3_295, %c0_296, %c0_297], %409 {strides = array<i32>} : memref<1x4x16x16xf32, #tpu.memory_space<vmem>>, vector<1x1x16x16xf32>,
    return
  }
  func.func @transform_0(%arg0: i32) -> (i32, i32, i32, i32) {
    %c0_i32 = arith.constant 0 : i32
    %c0_i32_0 = arith.constant 0 : i32
    %c0_i32_1 = arith.constant 0 : i32
    %c0_i32_2 = arith.constant 0 : i32
    return %arg0, %c0_i32, %c0_i32_0, %c0_i32_1 : i32, i32, i32, i32
  }
  func.func @transform_1(%arg0: i32) -> (i32, i32) {
    %c0_i32 = arith.constant 0 : i32
    %c0_i32_0 = arith.constant 0 : i32
    %c0_i32_1 = arith.constant 0 : i32
    return %c0_i32, %c0_i32_0 : i32, i32
  }
  func.func @transform_2(%arg0: i32) -> i32 {
    %c0_i32 = arith.constant 0 : i32
    %c0_i32_0 = arith.constant 0 : i32
    return %c0_i32 : i32
  }
  func.func @transform_3(%arg0: i32) -> (i32, i32) {
    %c0_i32 = arith.constant 0 : i32
    %c0_i32_0 = arith.constant 0 : i32
    %c0_i32_1 = arith.constant 0 : i32
    return %c0_i32, %c0_i32_0 : i32, i32
  }
  func.func @transform_4(%arg0: i32) -> i32 {
    %c0_i32 = arith.constant 0 : i32
    %c0_i32_0 = arith.constant 0 : i32
    return %c0_i32 : i32
  }
  func.func @transform_5(%arg0: i32) -> (i32, i32) {
    %c0_i32 = arith.constant 0 : i32
    %c0_i32_0 = arith.constant 0 : i32
    %c0_i32_1 = arith.constant 0 : i32
    return %c0_i32, %c0_i32_0 : i32, i32
  }
  func.func @transform_6(%arg0: i32) -> i32 {
    %c0_i32 = arith.constant 0 : i32
    %c0_i32_0 = arith.constant 0 : i32
    return %c0_i32 : i32
  }
  func.func @transform_7(%arg0: i32) -> (i32, i32, i32, i32) {
    %c0_i32 = arith.constant 0 : i32
    %c0_i32_0 = arith.constant 0 : i32
    %c0_i32_1 = arith.constant 0 : i32
    %c0_i32_2 = arith.constant 0 : i32
    return %arg0, %c0_i32, %c0_i32_0, %c0_i32_1 : i32, i32, i32, i32
  }
}

</mosaic_0001>

<bundles_post_ra>
// kernel: tpu_custom_call.1
= control target key start
LH: loop header
LB: loop body
LE: loop exit
PB: predicated region body
PF: predicated region fallthrough
CT: control target
= control target key end

     0   :  { %s2459_s0 = inlined_call_operand.hbm [shape: f32[2,4,16,16], index: 0, kind: input, shape index: {}]   ;;  %s2460_s1 = inlined_call_operand.hbm [shape: f32[4,4], index: 1, kind: input, shape index: {}]   ;;  %s2461_s2 = inlined_call_operand.vmem [shape: f32[4], index: 2, kind: input, shape index: {}]   ;;  %s2462_s3 = inlined_call_operand.vmem [shape: f32[4,9], index: 3, kind: input, shape index: {}]   ;;  %s2463_s4 = inlined_call_operand.vmem [shape: f32[4], index: 4, kind: input, shape index: {}]   ;;  %s2464_s5 = inlined_call_operand.vmem [shape: f32[4,4], index: 5, kind: input, shape index: {}]   ;;  %s2465_s6 = inlined_call_operand.vmem [shape: f32[4], index: 6, kind: input, shape index: {}]   ;;  %s2466_s7 = inlined_call_operand.hbm [shape: f32[2,4,16,16], index: 7, kind: output, shape index: {}]  }
   0x1   :  { %2471 = sst [smem:[#allocation23_spill]] %s2459_s0 }
   0x2   :  { %2472 = sst [smem:[#allocation24_spill]] %s2460_s1 }
   0x3   :  { %12 = vsyncpa [#allocation4], 0 }
   0x4   :  { %14 = vsyncpa [#allocation4 + $0x1], 0 }
   0x5   :  { %15 = vsyncpa [#allocation6], 0 }
   0x6   :  { %16 = vsyncpa [#allocation7], 0 }
   0x7   :  { %17 = vsyncpa [#allocation11], 0 }
   0x8   :  { %18 = vsyncpa [#allocation14], 0 }
   0x9   :  { %19 = vsyncpa [#allocation5], 0 }
   0xa   :  { %21 = vsyncpa [#allocation5 + $0x1], 0  ;;  %s1745_s24 = smov 0   ;;  %s1747_s25 = smov 0  }
   0xb   :  { %s1749_s26 = smov 0   ;;  %s1751_s27 = smov 0  }
   0xc LB: > { %s243_s30 = sshll.u32 %s2462_s3, 4  ;;  %s1769_s8 = sadd.s32 4294967295, %s1687_s27   ;;  %s1687_s27 = sphi %s1751_s27, %s2500_s27   ;;  %s1683_s26 = sphi %s1749_s26, %s2499_s26   ;;  %s1679_s25 = sphi %s1747_s25, %s2498_s25   ;;  %s1675_s24 = sphi %s1745_s24, %s2497_s24   ;;  %s244_s30 = int_to_ptr.vmem [resolvable:$true] %s243_s30 }
   0xd   : > { %p1259_p0 = scmp.ge.s32.totalorder %s1687_s27, 1  ;;  %p2467_p1 = scmp.eq.s32.totalorder %s1769_s8, 0 }
   0xe   : > { %p210_p2 = scmp.lt.s32.totalorder %s1687_s27, 3  ;;  %s265_s12 = sshll.u32 %s2464_s5, 4  ;;  %s266_s12 = int_to_ptr.vmem [resolvable:$true] %s265_s12 }
   0xf   : > { %s232_s15 = sshll.u32 %s2461_s2, 4  ;;  %s254_s19 = sshll.u32 %s2463_s4, 4  ;;  %s1793_s15 = int_to_ptr.vmem [resolvable:$true] %s232_s15  ;;  %s1798_s19 = int_to_ptr.vmem [resolvable:$true] %s254_s19 }
  0x10   : > { %p1774_p3 = pnand %p1259_p0, %p210_p2  ;;  %s1487_s20 = scalar_lea.vmem %s244_s30, 64 }
  0x11   : > { %p1488_p7 = scmp.ne.s32.totalorder %s244_s30, %s1487_s20  ;;  %p1495_p11 = scmp.lt.s32.totalorder %s244_s30, %s244_s30 }
  0x12   : > { %s2473_s9 = scalar_select %p1774_p3, 1, 0 }
  0x13   : > { %p1400_p5 = pneg %p1774_p3  ;;  %p1496_p12 = scmp.lt.s32.totalorder %s1487_s20, %s1487_s20 }
  0x15   : > { %p1789_p6 = pnand %p1400_p5, %p2467_p1  ;;  %p1497_p13 = por %p1496_p12, %p1495_p11 }
  0x17   : > { %p1802_p8 = pneg %p1789_p6 }
  0x19   : > { %p1490_p9 = pnand %p1802_p8, %p1488_p7 }
  0x1b   : > { %p1491_p10 = pneg %p1490_p9 }
  0x1d   : > { %p1498_p0 = pnand %p1497_p13, %p1491_p10 }
  0x1f   : > { %1501 = shalt.err (!%p1498_p0)
}
  0x20   : > { %s1689_s22 = smov [#allocation10]   ;;  %s1502_s23 = scalar_lea.vmem %s266_s12, 64 }
  0x21   : > { %1409 = dma.vmem_to_smem (!%p1789_p6), %s244_s30, 64, %s1689_s22, [#allocation11]  }
  0x22   : > { %p1503_p2 = scmp.ne.s32.totalorder %s266_s12, %s1502_s23  ;;  %p1510_p1 = scmp.lt.s32.totalorder %s266_s12, %s266_s12 }
  0x23   : > { %p1511_p3 = scmp.lt.s32.totalorder %s1502_s23, %s1502_s23 }
  0x24   : > { %p1505_p5 = pnand %p1503_p2, %p1802_p8 }
  0x25   : > { %p1512_p7 = por %p1511_p3, %p1510_p1 }
  0x26   : > { %p1506_p4 = pneg %p1505_p5 }
  0x28   : > { %p1513_p9 = pnand %p1512_p7, %p1506_p4 }
  0x2a   : > { %1516 = shalt.err (!%p1513_p9)
}
  0x2b   : > { %s1690_s28 = smov [#allocation13]   ;;  %s2476_s1 = sld [smem:[#allocation24_spill]] }
  0x2c   : > { %1415 = dma.vmem_to_smem (!%p1789_p6), %s266_s12, 64, %s1690_s28, [#allocation14]  }
  0x31   : > { %s1517_s11 = scalar_lea.hbm %s2476_s1, 64 }
  0x32   : > { %p1518_p10 = scmp.ne.s32.totalorder %s2476_s1, %s1517_s11  ;;  %p1524_p1 = scmp.lt.u32.totalorder %s1517_s11, %s2476_s1 }
  0x34   : > { %p1520_p11 = pnand %p1518_p10, %p1802_p8 }
  0x36   : > { %p1521_p12 = pneg %p1520_p11 }
  0x38   : > { %p1526_p3 = pnand %p1524_p1, %p1521_p12 }
  0x3a   : > { %1529 = shalt.err (!%p1526_p3)
}
  0x3b   : > { %s1691_s18 = smov [#allocation8]   ;;  %s1530_s22 = scalar_lea.vmem %s1793_s15, 16 }
  0x3c   : > { %1403 = dma.hbm_to_smem (!%p1789_p6), %s2476_s1, 64, %s1691_s18, [#allocation6]  }
  0x3d   : > { %p1531_p4 = scmp.ne.s32.totalorder %s1793_s15, %s1530_s22  ;;  %p1538_p2 = scmp.lt.s32.totalorder %s1793_s15, %s1793_s15 }
  0x3e   : > { %p1539_p5 = scmp.lt.s32.totalorder %s1530_s22, %s1530_s22 }
  0x3f   : > { %p1533_p13 = pnand %p1531_p4, %p1802_p8 }
  0x40   : > { %p1540_p7 = por %p1539_p5, %p1538_p2 }
  0x41   : > { %p1534_p0 = pneg %p1533_p13 }
  0x43   : > { %p1541_p9 = pnand %p1540_p7, %p1534_p0 }
  0x45   : > { %1544 = shalt.err (!%p1541_p9)
}
  0x46   : > { %s1692_s23 = smov [#allocation9]   ;;  %s276_s10 = sshll.u32 %s2465_s6, 4  ;;  %s277_s10 = int_to_ptr.vmem [resolvable:$true] %s276_s10 }
  0x47   : > { %1406 = dma.vmem_to_smem (!%p1789_p6), %s1793_s15, 16, %s1692_s23, [#allocation7]  }
  0x48   : > { %s1545_s11 = scalar_lea.vmem %s1798_s19, 16  ;;  %p1553_p1 = scmp.lt.s32.totalorder %s1798_s19, %s1798_s19 }
  0x49   : > { %p1546_p10 = scmp.ne.s32.totalorder %s1798_s19, %s1545_s11  ;;  %p1554_p3 = scmp.lt.s32.totalorder %s1545_s11, %s1545_s11 }
  0x4b   : > { %p1548_p11 = pnand %p1546_p10, %p1802_p8  ;;  %p1555_p4 = por %p1554_p3, %p1553_p1 }
  0x4d   : > { %p1549_p12 = pneg %p1548_p11 }
  0x4f   : > { %p1556_p13 = pnand %p1555_p4, %p1549_p12 }
  0x51   : > { %1559 = shalt.err (!%p1556_p13)
}
  0x52   : > { %s1693_s30 = smov [#allocation12]   ;;  %s1560_s15 = scalar_lea.vmem %s277_s10, 16 }
  0x53   : > { %1412 = dma.vmem_to_smem (!%p1789_p6), %s1798_s19, 16, %s1693_s30, [#allocation11]  }
  0x54   : > { %p1561_p0 = scmp.ne.s32.totalorder %s277_s10, %s1560_s15  ;;  %p1568_p7 = scmp.lt.s32.totalorder %s277_s10, %s277_s10 }
  0x55   : > { %p1569_p9 = scmp.lt.s32.totalorder %s1560_s15, %s1560_s15 }
  0x56   : > { %p1563_p2 = pnand %p1561_p0, %p1802_p8 }
  0x57   : > { %p1570_p10 = por %p1569_p9, %p1568_p7 }
  0x58   : > { %p1564_p5 = pneg %p1563_p2 }
  0x5a   : > { %p1571_p11 = pnand %p1570_p10, %p1564_p5 }
  0x5c   : > { %1574 = shalt.err (!%p1571_p11)
}
  0x5d   : > { %s1694_s13 = smov [#allocation15]   ;;  %s1258_s19 = sadd.s32 4294967294, %s1687_s27  }
  0x5e   : > { %1418 = dma.vmem_to_smem (!%p1789_p6), %s277_s10, 16, %s1694_s13, [#allocation14]  }
  0x5f   : > { %s1857_s21 = sadd.s32 1, %s1687_s27   ;;  %s34_s14 = sadd.s32 1, %s1683_s26 }
  0x60   : > { %s31_s16 = ssub.s32 %s1687_s27, %s1857_s21  ;;  %p41_p12 = scmp.ne.s32.totalorder %s1683_s26, %s1679_s25 }
  0x61   : > { %p32_p8 = scmp.eq.s32.totalorder %s31_s16, 0  ;;  %p42_p1 = scmp.eq.s32.totalorder %s1687_s27, 0 }
  0x62   : > { %p47_p3 = scmp.ne.s32.totalorder %s1679_s25, %s1675_s24  ;;  %p2478_p13 = scmp.eq.s32.totalorder %s1769_s8, 0 }
  0x63   : > { %s1868_s17 = scalar_select %p32_p8, %s1683_s26, %s34_s14  }
  0x64   : > { %p1870_p4 = por %p42_p1, %p41_p12  ;;  %p1876_p6 = por %p2478_p13, %p47_p3 }
  0x65   : > { %p197_p0 = scmp.eq.s32.totalorder %s1769_s8, 1  ;;  %p203_p2 = scmp.eq.s32.totalorder %s1258_s19, 1 }
  0x66   : > { %p1433_p5 = scmp.lt.s32.totalorder %s1687_s27, 2  ;;  %s287_s20 = sand.u32 1, %s1683_s26  }
  0x67   : > { %p1883_p7 = por %p197_p0, %p41_p12  ;;  %p1887_p9 = por %p203_p2, %p47_p3 }
  0x68   : > { %s1267_s28 = sshll.u32 %s287_s20, 6  ;;  %s1370_s29 = sshll.u32 %s1687_s27, 10 }
  0x69   : > { %s2480_s22 = scalar_select %p1883_p7, 1, 0 }
  0x6a   : > { %s2481_s23 = scalar_select %p1887_p9, 1, 0 }
  0x6b   : > { %s2482_s0 = sld [smem:[#allocation23_spill]]  ;;  %s291_s15 = scalar_lea.vmem [#allocation3], %s1267_s28 }
  0x6c   : > { %s298_s13 = sshll.u32 %s291_s15, 4  ;;  %p1901_p10 = pnand %p1433_p5, %p1870_p4  ;;  %s1897_s13 = int_to_ptr.vmem [resolvable:$true] %s298_s13 }
  0x6d   : > { %s1905_s16 = scalar_lea.sflag [#allocation4], %s287_s20 }
  0x6e   : > { %p1577_p8 = pneg %p1901_p10 }
  0x71   : > { %s1895_s30 = scalar_lea.hbm %s2482_s0, %s1370_s29  ;;  %s1580_s18 = scalar_lea.hbm %s2482_s0, 2048 }
  0x72   : > { %s1575_s14 = scalar_lea.hbm %s1895_s30, 1024  ;;  %p1581_p3 = scmp.lt.u32.totalorder %s1895_s30, %s2482_s0 }
  0x73   : > { %p1576_p11 = scmp.ne.s32.totalorder %s1895_s30, %s1575_s14  ;;  %p1582_p4 = scmp.lt.u32.totalorder %s1580_s18, %s1575_s14 }
  0x74   : > { %p1584_p0 = scmp.lt.u32.totalorder %s1575_s14, %s1895_s30 }
  0x75   : > { %p1578_p12 = pnand %p1577_p8, %p1576_p11  ;;  %p1583_p13 = por %p1582_p4, %p1581_p3 }
  0x77   : > { %p1579_p1 = pneg %p1578_p12  ;;  %p1585_p2 = por %p1584_p0, %p1583_p13 }
  0x79   : > { %p1586_p5 = pnand %p1585_p2, %p1579_p1 }
  0x7b   : > { %1589 = shalt.err (!%p1586_p5)
}
  0x7c   : > { %s1590_s20 = scalar_lea.vmem %s1897_s13, 1024  ;;  %s1695_s15 = smov [#allocation3]  }
  0x7d   : > { %p1591_p11 = scmp.ne.s32.totalorder %s1897_s13, %s1590_s20  ;;  %s1595_s28 = sshll.u32 %s1695_s15, 4  ;;  %s1596_s28 = int_to_ptr.vmem [resolvable:$false] %s1595_s28 }
  0x7e   : > { %s1597_s29 = scalar_lea.vmem %s1596_s28, 2048  ;;  %p1598_p7 = scmp.lt.s32.totalorder %s1897_s13, %s1596_s28 }
  0x7f   : > { %p1593_p12 = pnand %p1591_p11, %p1577_p8  ;;  %p1599_p3 = scmp.lt.s32.totalorder %s1597_s29, %s1590_s20 }
  0x81   : > { %p1594_p9 = pneg %p1593_p12  ;;  %p1600_p4 = por %p1599_p3, %p1598_p7 }
  0x83   : > { %p1601_p13 = pnand %p1600_p4, %p1594_p9 }
  0x85   : > { %1604 = shalt.err (!%p1601_p13)
}
  0x86   : > { %s1696_s14 = smov 128   ;;  %s1697_s18 = smov 8  }
  0x87   : > { %1422 = dma.hbm_to_vmem [thread:$0]  (!%p1901_p10), %s1895_s30, 1024, %s1897_s13, %s1905_s16, %s1696_s14, %s1696_s14, %s1697_s18  }
  0x88   : > { %p2484_p8 = scmp.ne.s32.totalorder %s2473_s9, 0 }
  0x89   : > { %s1936_s10 = sand.u32 (!%p2484_p8), 1, %s1679_s25  }
  0x8a   : > { %310 = sbr.rel (%p2484_p8) target bundleno = 545 (0x221), region = 48  ;;  %s2470_s11 = sshll.u32 (!%p2484_p8), %s1936_s10, 6 }
  0x8b   : > { %s313_s20 = scalar_lea.sflag (!%p2484_p8), [#allocation4], %s1936_s10  ;;  %s1942_s15 = scalar_lea.vmem (!%p2484_p8), [#allocation3], %s2470_s11 }
  0x91   : > { %1650 = dma.done.wait (%p1876_p6), %s313_s20, 1024  }
  0x92   : > { %1652 = vsyncadd (%p1876_p6), %s313_s20, 4294966272  ;;  %p2485_p7 = scmp.eq.s32.totalorder %s1769_s8, 0 }
  0x94   : > { %1654 = dma.done.wait (%p2485_p7), [#allocation6], 64   ;;  %p2486_p9 = pmov %p2485_p7 }
  0x95   : > { %p2487_p10 = pmov %p2485_p7 }
  0x96   : > { %1656 = vsyncadd (%p2486_p9), [#allocation6], 4294967232 }
  0x97   : > { %1658 = dma.done.wait (%p2487_p10), [#allocation7], 16   ;;  %p2488_p1 = pmov %p2485_p7 }
  0x99   : > { %1660 = vsyncadd (%p2488_p1), [#allocation7], 4294967280  ;;  %p2489_p0 = pmov %p2488_p1 }
  0x9b   : > { %1662 = dma.done.wait (%p2489_p0), [#allocation11], 80   ;;  %p2490_p2 = pmov %p2489_p0 }
  0x9c   : > { %p2491_p6 = pmov %p2489_p0 }
  0x9d   : > { %1664 = vsyncadd (%p2490_p2), [#allocation11], 4294967216 }
  0x9e   : > { %1666 = dma.done.wait (%p2491_p6), [#allocation14], 80   ;;  %p2492_p5 = pmov %p2489_p0 }
  0xa0   : > { %1668 = vsyncadd (%p2492_p5), [#allocation14], 4294967216 }
  0xa1   : > { %345 = sfence }
  0xa2   : > { %s1964_s9 = sld [smem:[#allocation9]]  ;;  %s1968_s30 = sld [smem:[#allocation8 + $0x1]]  ;;  %vm372_vm0 = vcmask 146432   ;;  %v1977_v0 = vld [vmem:[%s1942_s15] sm:$0xff]  ;;  %v1698_v1 = vmov 0.0   ;;  %v1984_v2 = vld [vmem:[%s1942_s15 + $0x8] sm:$0xff] }
  0xa3   : > { %s1966_s12 = sld [smem:[#allocation8]]  ;;  %s1970_s13 = sld [smem:[#allocation8 + $0x2]]  ;;  %373 = vst.msk [vmem:[#allocation2] sm:$0xff] %vm372_vm0, %v1698_v1  ;;  %374 = vst.msk [vmem:[#allocation2 + $0x8] sm:$0xff] %vm372_vm0, %v1698_v1  ;;  %v1987_v3 = vld [vmem:[%s1942_s15 + $0x10] sm:$0xff]  ;;  %v1994_v4 = vld [vmem:[%s1942_s15 + $0x18] sm:$0xff] }
  0xa4   : > { %s1972_s19 = sld [smem:[#allocation8 + $0x3]]  ;;  %s1974_s16 = sld [smem:[#allocation9 + $0x1]]  ;;  %377 = vst.msk [vmem:[#allocation2 + $0x18] sm:$0xff] %vm372_vm0, %v1698_v1  ;;  %378 = vst.msk [vmem:[#allocation2 + $0x20] sm:$0xff] %vm372_vm0, %v1698_v1  ;;  %v1997_v5 = vld [vmem:[%s1942_s15 + $0x20] sm:$0xff]  ;;  %v2000_v6 = vld [vmem:[%s1942_s15 + $0x28] sm:$0xff] }
  0xa5   : > { %s1979_s28 = sld [smem:[#allocation8 + $0x80]]  ;;  %s1981_s29 = sld [smem:[#allocation8 + $0x81]]  ;;  %380 = vst.msk [vmem:[#allocation2 + $0x30] sm:$0xff] %vm372_vm0, %v1698_v1  ;;  %381 = vst.msk [vmem:[#allocation2 + $0x38] sm:$0xff] %vm372_vm0, %v1698_v1  ;;  %vm375_vm1 = vcmask 140288   ;;  %v2005_v9 = vld [vmem:[%s1942_s15 + $0x30] sm:$0xff] }
  0xa6   : > { %383 = vst.msk [vmem:[#allocation2 + $0x48] sm:$0xff] %vm372_vm0, %v1698_v1  ;;  %384 = vst.msk [vmem:[#allocation2 + $0x50] sm:$0xff] %vm372_vm0, %v1698_v1  ;;  %s1989_s14 = sld [smem:[#allocation8 + $0x82]]  ;;  %s1991_s18 = sld [smem:[#allocation8 + $0x83]]  ;;  %v2008_v10 = vld [vmem:[%s1942_s15 + $0x38] sm:$0xff]  ;;  %vm431_vm2 = vcmask 138248  }
  0xa7   : > { %s2014_s20 = sld [smem:[#allocation9 + $0x2]]  ;;  %s2016_s11 = sld [smem:[#allocation8 + $0x100]]  ;;  %376 = vst.msk [vmem:[#allocation2 + $0x10] sm:$0x3] %vm375_vm1, %v1698_v1  ;;  %379 = vst.msk [vmem:[#allocation2 + $0x28] sm:$0x3] %vm375_vm1, %v1698_v1 }
  0xa8   : > { %v398_v7 = vstv %s1964_s9  ;;  %v406_v13 = vstv %s1968_s30  ;;  %382 = vst.msk [vmem:[#allocation2 + $0x40] sm:$0x3] %vm375_vm1, %v1698_v1  ;;  %385 = vst.msk [vmem:[#allocation2 + $0x58] sm:$0x3] %vm375_vm1, %v1698_v1  ;;  %s2022_s15 = sld [smem:[#allocation8 + $0x101]]  ;;  %s2024_s9 = sld [smem:[#allocation8 + $0x102]] }
  0xa9   : > { %v400_v8 = vstv %s1966_s12  ;;  %v412_v14 = vstv %s1970_s13  ;;  %v407_v15 = vmul.f32 %v1987_v3, %v406_v13  ;;  %v408_v16 = vmul.f32 %v1994_v4, %v406_v13  ;;  %s2032_s12 = sld [smem:[#allocation8 + $0x103]]  ;;  %s2042_s13 = sld [smem:[#allocation8 + $0x180]] }
  0xaa   : > { %v401_v11 = vmul.f32 %v400_v8, %v1977_v0  ;;  %v402_v12 = vmul.f32 %v400_v8, %v1984_v2  ;;  %v413_v17 = vmul.f32 %v1997_v5, %v412_v14  ;;  %v414_v18 = vmul.f32 %v2000_v6, %v412_v14  ;;  %s2040_s30 = sld [smem:[#allocation9 + $0x3]]  ;;  %s2301_s0 = sld [smem:[#allocation13 + $0x81]] }
  0xab   : > { %v418_v21 = vstv %s1972_s19  ;;  %v435_v22 = vstv %s1974_s16  ;;  %v437_v25 = vstv %s1979_s28  ;;  %v443_v26 = vstv %s1981_s29  ;;  %s2044_s19 = sld [smem:[#allocation8 + $0x181]]  ;;  %s2050_s16 = sld [smem:[#allocation8 + $0x182]] }
  0xac   : > { %v403_v19 = vadd.f32 %v401_v11, %v398_v7  ;;  %v404_v20 = vadd.f32 %v402_v12, %v398_v7  ;;  %v419_v23 = vmul.f32 %v2005_v9, %v418_v21  ;;  %v420_v24 = vmul.f32 %v2008_v10, %v418_v21  ;;  %s2052_s28 = sld [smem:[#allocation8 + $0x183]]  ;;  %s1699_s29 = smov 1  }
  0xad   : > { %v438_v29 = vmul.f32 %v437_v25, %v1977_v0  ;;  %v439_v30 = vmul.f32 %v437_v25, %v1984_v2  ;;  %v444_v31 = vmul.f32 %v1987_v3, %v443_v26  ;;  %v445_v32 = vmul.f32 %v1994_v4, %v443_v26  ;;  %s2303_s1 = sld [smem:[#allocation13 + $0x101]]  ;;  %p2494_p12 = scmp.ne.s32.totalorder %s2480_s22, 0 }
  0xae   : > { %v409_v27 = vadd.f32 %v407_v15, %v403_v19  ;;  %v410_v28 = vadd.f32 %v408_v16, %v404_v20  ;;  %v449_v33 = vstv %s1989_s14  ;;  %v455_v34 = vstv %s1991_s18  ;;  %s2089_s14 = sld [smem:[#allocation10 + $0x2]]  ;;  %s2093_s18 = sld [smem:[#allocation10 + $0x4]] }
  0xaf   : > { %v440_v37 = vadd.f32 %v438_v29, %v435_v22  ;;  %v441_v38 = vadd.f32 %v439_v30, %v435_v22  ;;  %v450_v39 = vmul.f32 %v1997_v5, %v449_v33  ;;  %v451_v40 = vmul.f32 %v2000_v6, %v449_v33 }
  0xb0   : > { %v415_v35 = vadd.f32 %v413_v17, %v409_v27  ;;  %v416_v36 = vadd.f32 %v414_v18, %v410_v28  ;;  %v456_v41 = vmul.f32 %v2005_v9, %v455_v34  ;;  %v457_v42 = vmul.f32 %v2008_v10, %v455_v34 }
  0xb1   : > { %v446_v45 = vadd.f32 %v444_v31, %v440_v37  ;;  %v447_v46 = vadd.f32 %v445_v32, %v441_v38  ;;  %v472_v47 = vstv %s2014_s20  ;;  %v474_v48 = vstv %s2016_s11  ;;  %s1303_s11 = sld [smem:[#allocation10 + $0x1]]  ;;  %s2100_s20 = sld [smem:[#allocation10 + $0x5]] }
  0xb2   : > { %v421_v43 = vadd.f32 %v419_v23, %v415_v35  ;;  %v422_v44 = vadd.f32 %v420_v24, %v416_v36  ;;  %v480_v49 = vstv %s2022_s15  ;;  %v486_v50 = vstv %s2024_s9  ;;  %s1700_s15 = smov 127   ;;  %s2112_s9 = sld [smem:[#allocation10 + $0x7]] }
  0xb3   : > { %v452_v51 = vadd.f32 %v450_v39, %v446_v45  ;;  %v453_v52 = vadd.f32 %v451_v40, %v447_v46  ;;  %v475_v53 = vmul.f32 %v474_v48, %v1977_v0  ;;  %v481_v54 = vmul.f32 %v1987_v3, %v480_v49 }
  0xb4   : > { %425 = vrot.lane.b32.xlu0 %v421_v43, %s1699_s29  ;;  %v492_v55 = vstv %s2032_s12  ;;  %v476_v56 = vmul.f32 %v474_v48, %v1984_v2  ;;  %v482_v57 = vmul.f32 %v1994_v4, %v480_v49  ;;  %v487_v61 = vmul.f32 %v1997_v5, %v486_v50  ;;  %s1701_s12 = smov 126  }
  0xb5   : > { %v458_v58 = vadd.f32 %v456_v41, %v452_v51  ;;  %v459_v59 = vadd.f32 %v457_v42, %v453_v52  ;;  %v477_v60 = vadd.f32 %v475_v53, %v472_v47  ;;  %v493_v62 = vmul.f32 %v2005_v9, %v492_v55 }
  0xb6   : > { %v478_v63 = vadd.f32 %v476_v56, %v472_v47  ;;  %v488_v1 = vmul.f32 %v2000_v6, %v486_v50  ;;  %v509_v7 = vstv %s2040_s30  ;;  %v494_v11 = vmul.f32 %v2008_v10, %v492_v55  ;;  %s2116_s30 = sld [smem:[#allocation10 + $0x81]] }
  0xb7   : > { %462 = vrot.lane.b32.xlu1 %v458_v58, %s1699_s29  ;;  %v483_v8 = vadd.f32 %v481_v54, %v477_v60  ;;  %v511_v12 = vstv %s2042_s13  ;;  %v517_v13 = vstv %s2044_s19  ;;  %v523_v17 = vstv %s2050_s16  ;;  %s1315_s13 = sld [smem:[#allocation10 + $0x84]]  ;;  %s1310_s19 = sld [smem:[#allocation10 + $0x8]] }
  0xb8   : > { %427 = vrot.lane.b32.xlu0 %v422_v44, %s1699_s29  ;;  %v484_v14 = vadd.f32 %v482_v57, %v478_v63  ;;  %v512_v15 = vmul.f32 %v511_v12, %v1977_v0  ;;  %v518_v16 = vmul.f32 %v1987_v3, %v517_v13  ;;  %v529_v19 = vstv %s2052_s28  ;;  %s1313_s16 = sld [smem:[#allocation10 + $0x82]]  ;;  %s1316_s28 = sld [smem:[#allocation10 + $0x85]] }
  0xb9   : > { %v489_v18 = vadd.f32 %v487_v61, %v483_v8  ;;  %v513_v20 = vmul.f32 %v511_v12, %v1984_v2  ;;  %v524_v23 = vmul.f32 %v1997_v5, %v523_v17  ;;  %v519_v24 = vmul.f32 %v1994_v4, %v517_v13 }
  0xba   : > { %v490_v21 = vadd.f32 %v488_v1, %v484_v14  ;;  %v514_v22 = vadd.f32 %v512_v15, %v509_v7  ;;  %v525_v27 = vmul.f32 %v2000_v6, %v523_v17  ;;  %v530_v3 = vmul.f32 %v2005_v9, %v529_v19 }
  0xbb   : > { %464 = vrot.lane.b32.xlu1 %v459_v59, %s1699_s29  ;;  %v495_v25 = vadd.f32 %v493_v62, %v489_v18  ;;  %v515_v26 = vadd.f32 %v513_v20, %v509_v7  ;;  %v531_v2 = vmul.f32 %v2008_v10, %v529_v19  ;;  %v552_v32 = vstv %s1303_s11  ;;  %s1322_s11 = sld [smem:[#allocation10 + $0x101]] }
  0xbc   : > { %v496_v0 = vadd.f32 %v494_v11, %v490_v21  ;;  %v520_v28 = vadd.f32 %v518_v16, %v514_v22  ;;  %v566_v36 = vstv %s2089_s14  ;;  %v586_v43 = vstv %s2093_s18  ;;  %s2165_s14 = sld [smem:[#allocation10 + $0x104]]  ;;  %s1319_s18 = sld [smem:[#allocation10 + $0x88]] }
  0xbd   : > { %499 = vrot.lane.b32.xlu0 %v495_v25, %s1699_s29  ;;  %v521_v29 = vadd.f32 %v519_v24, %v515_v26  ;;  %v600_v49 = vstv %s2100_s20  ;;  %v620_v53 = vstv %s2112_s9  ;;  %v664_v55 = vstv %s2116_s30  ;;  %s1323_s20 = sld [smem:[#allocation10 + $0x102]]  ;;  %s1326_s9 = sld [smem:[#allocation10 + $0x105]] }
  0xbe   : > { %v526_v30 = vadd.f32 %v524_v23, %v520_v28  ;;  %v698_v63 = vstv %s1315_s13  ;;  %v634_v11 = vstv %s1310_s19  ;;  %v678_v14 = vstv %s1313_s16  ;;  %s1328_s30 = sld [smem:[#allocation10 + $0x107]]  ;;  %s1332_s13 = sld [smem:[#allocation10 + $0x181]] }
  0xbf   : > { %501 = vrot.lane.b32.xlu1 %v496_v0, %s1699_s29  ;;  %v527_v5 = vadd.f32 %v525_v27, %v521_v29  ;;  %v712_v17 = vstv %s1316_s28  ;;  %s2204_s19 = sld [smem:[#allocation10 + $0x184]]  ;;  %s1329_s16 = sld [smem:[#allocation10 + $0x108]]  ;;  %vm1019_vm3 = vcmask 130048  }
  0xc0   : > { %v532_v4 = vadd.f32 %v530_v3, %v526_v30  ;;  %s1333_s28 = sld [smem:[#allocation10 + $0x182]] }
  0xc1   : > { %v533_v31 = vadd.f32 %v531_v2, %v527_v5  ;;  %v776_v23 = vstv %s1322_s11  ;;  %s1338_s11 = sld [smem:[#allocation10 + $0x187]] }
  0xc2   : > { %536 = vrot.lane.b32.xlu0 %v532_v4, %s1699_s29  ;;  %v810_v3 = vstv %s2165_s14  ;;  %v746_v4 = vstv %s1319_s18  ;;  %s1339_s14 = sld [smem:[#allocation10 + $0x188]] }
  0xc3   : > { %538 = vrot.lane.b32.xlu1 %v533_v31, %s1699_s29  ;;  %s1318_s29 = sld [smem:[#allocation10 + $0x87]]  ;;  %s547_s18 = sld [smem:[#allocation10]] }
  0xc9   : > { %v732_v21 = vstv %s1318_s29  ;;  %s1336_s29 = sld [smem:[#allocation10 + $0x185]] }
 0x126   : > { %v426_v6 = vpop.permute.xlu0 %425 }
 0x127   : > { %432 = vst.msk [vmem:[#allocation2 + $0x1] sm:$0xff] %vm431_vm2, %v426_v6 }
 0x129   : > { %v463_v10 = vpop.permute.xlu1 %462 }
 0x12a   : > { %v428_v9 = vpop.permute.xlu0 %427  ;;  %469 = vst.msk [vmem:[#allocation2 + $0x19] sm:$0xff] %vm431_vm2, %v463_v10 }
 0x12b   : > { %433 = vst.msk [vmem:[#allocation2 + $0x9] sm:$0xff] %vm431_vm2, %v428_v9  ;;  %v790_v9 = vstv %s1323_s20  ;;  %s1305_s20 = sld [smem:[#allocation10 + $0x3]] }
 0x12d   : > { %v465_v34 = vpop.permute.xlu1 %464 }
 0x12e   : > { %v2095_v33 = vld [vmem:[#allocation2] sm:$0xff]  ;;  %470 = vst.msk [vmem:[#allocation2 + $0x21] sm:$0xff] %vm431_vm2, %v465_v34  ;;  %v824_v34 = vstv %s1326_s9  ;;  %s1308_s9 = sld [smem:[#allocation10 + $0x6]] }
 0x12f   : > { %v553_v35 = vmul.f32 %v552_v32, %v2095_v33  ;;  %v500_v37 = vpop.permute.xlu0 %499  ;;  %v567_v41 = vmul.f32 %v566_v36, %v2095_v33  ;;  %v2109_v42 = vld [vmem:[#allocation2 + $0x1] sm:$0xff] }
 0x130   : > { %506 = vst.msk [vmem:[#allocation2 + $0x31] sm:$0xff] %vm431_vm2, %v500_v37  ;;  %v587_v47 = vmul.f32 %v586_v43, %v2109_v42  ;;  %v601_v51 = vmul.f32 %v600_v49, %v2109_v42 }
 0x131   : > { %557 = vrot.lane.b32.xlu0 %v553_v35, %s1700_s15  ;;  %v502_v39 = vpop.permute.xlu1 %501  ;;  %v2134_v54 = vld [vmem:[#allocation2 + $0x18] sm:$0xff] }
 0x132   : > { %v2104_v38 = vld [vmem:[#allocation2 + $0x8] sm:$0xff]  ;;  %507 = vst.msk [vmem:[#allocation2 + $0x39] sm:$0xff] %vm431_vm2, %v502_v39  ;;  %v665_v59 = vmul.f32 %v664_v55, %v2134_v54  ;;  %v2147_v62 = vld [vmem:[#allocation2 + $0x19] sm:$0xff]  ;;  %v679_v16 = vmul.f32 %v678_v14, %v2134_v54  ;;  %v844_v39 = vstv %s1328_s30  ;;  %s2270_s30 = sld [smem:[#allocation12]] }
 0x133   : > { %v554_v40 = vmul.f32 %v552_v32, %v2104_v38  ;;  %v568_v46 = vmul.f32 %v566_v36, %v2104_v38  ;;  %v2122_v48 = vld [vmem:[#allocation2 + $0x9] sm:$0xff]  ;;  %v699_v7 = vmul.f32 %v698_v63, %v2147_v62  ;;  %v713_v19 = vmul.f32 %v712_v17, %v2147_v62 }
 0x134   : > { %v537_v44 = vpop.permute.xlu0 %536  ;;  %v588_v50 = vmul.f32 %v586_v43, %v2122_v48  ;;  %v2129_v52 = vld [vmem:[#allocation2 + $0x2] sm:$0xff]  ;;  %v602_v56 = vmul.f32 %v600_v49, %v2122_v48  ;;  %v2139_v58 = vld [vmem:[#allocation2 + $0xa] sm:$0xff] }
 0x135   : > { %559 = vrot.lane.b32.xlu1 %v554_v40, %s1700_s15  ;;  %571 = vrot.lane.b32.xlu0 %v567_v41, %s1701_s12  ;;  %543 = vst.msk [vmem:[#allocation2 + $0x49] sm:$0xff] %vm431_vm2, %v537_v44  ;;  %v539_v45 = vpop.permute.xlu1 %538  ;;  %v621_v57 = vmul.f32 %v620_v53, %v2129_v52  ;;  %v622_v60 = vmul.f32 %v620_v53, %v2139_v58  ;;  %v2145_v61 = vld [vmem:[#allocation2 + $0x20] sm:$0xff]  ;;  %v888_v41 = vstv %s1332_s13  ;;  %s2273_s13 = sld [smem:[#allocation10 + $0x86]] }
 0x136   : > { %544 = vst.msk [vmem:[#allocation2 + $0x51] sm:$0xff] %vm431_vm2, %v539_v45  ;;  %v666_v1 = vmul.f32 %v664_v55, %v2145_v61  ;;  %v2153_v8 = vld [vmem:[#allocation2 + $0x21] sm:$0xff]  ;;  %v635_v13 = vmul.f32 %v634_v11, %v2129_v52  ;;  %v636_v15 = vmul.f32 %v634_v11, %v2139_v58  ;;  %v680_v18 = vmul.f32 %v678_v14, %v2145_v61 }
 0x137   : > { %v700_v12 = vmul.f32 %v698_v63, %v2153_v8  ;;  %v2169_v20 = vld [vmem:[#allocation2 + $0x1a] sm:$0xff]  ;;  %v2173_v22 = vld [vmem:[#allocation2 + $0x30] sm:$0xff]  ;;  %v714_v24 = vmul.f32 %v712_v17, %v2153_v8  ;;  %v2177_v26 = vld [vmem:[#allocation2 + $0x22] sm:$0xff]  ;;  %v902_v63 = vstv %s1333_s28  ;;  %v936_v11 = vstv %s1336_s29  ;;  %s2280_s28 = sld [smem:[#allocation13]] }
 0x138   : > { %v733_v25 = vmul.f32 %v732_v21, %v2169_v20  ;;  %v777_v27 = vmul.f32 %v776_v23, %v2173_v22  ;;  %v2184_v28 = vld [vmem:[#allocation2 + $0x31] sm:$0xff]  ;;  %v734_v29 = vmul.f32 %v732_v21, %v2177_v26  ;;  %v747_v6 = vmul.f32 %v746_v4, %v2169_v20  ;;  %s2282_s29 = sld [smem:[#allocation13 + $0x80]] }
 0x139   : > { %573 = vrot.lane.b32.xlu1 %v568_v46, %s1701_s12  ;;  %591 = vrot.lane.b32.xlu0 %v587_v47, %s1700_s15  ;;  %v2182_v0 = vld [vmem:[#allocation2 + $0x38] sm:$0xff]  ;;  %v811_v30 = vmul.f32 %v810_v3, %v2184_v28  ;;  %v748_v10 = vmul.f32 %v746_v4, %v2177_v26  ;;  %v791_v32 = vmul.f32 %v790_v9, %v2173_v22 }
 0x13a   : > { %v778_v2 = vmul.f32 %v776_v23, %v2182_v0  ;;  %v2192_v5 = vld [vmem:[#allocation2 + $0x39] sm:$0xff]  ;;  %v792_v35 = vmul.f32 %v790_v9, %v2182_v0  ;;  %v825_v36 = vmul.f32 %v824_v34, %v2184_v28 }
 0x13b   : > { %v812_v31 = vmul.f32 %v810_v3, %v2192_v5  ;;  %v2208_v37 = vld [vmem:[#allocation2 + $0x32] sm:$0xff]  ;;  %v826_v43 = vmul.f32 %v824_v34, %v2192_v5  ;;  %v2216_v45 = vld [vmem:[#allocation2 + $0x3a] sm:$0xff] }
 0x13c   : > { %v2212_v40 = vld [vmem:[#allocation2 + $0x48] sm:$0xff]  ;;  %v845_v44 = vmul.f32 %v844_v39, %v2208_v37 }
 0x13d   : > { %593 = vrot.lane.b32.xlu1 %v588_v50, %s1700_s15  ;;  %605 = vrot.lane.b32.xlu0 %v601_v51, %s1701_s12  ;;  %v889_v46 = vmul.f32 %v888_v41, %v2212_v40  ;;  %v2221_v47 = vld [vmem:[#allocation2 + $0x50] sm:$0xff]  ;;  %v922_v50 = vstv %s2204_s19  ;;  %v846_v51 = vmul.f32 %v844_v39, %v2216_v45  ;;  %s2275_s19 = sld [smem:[#allocation10 + $0x100]] }
 0x13e   : > { %v2223_v49 = vld [vmem:[#allocation2 + $0x49] sm:$0xff]  ;;  %v890_v53 = vmul.f32 %v888_v41, %v2221_v47 }
 0x13f   : > { %v923_v55 = vmul.f32 %v922_v50, %v2223_v49  ;;  %v2245_v14 = vld [vmem:[#allocation2 + $0x4a] sm:$0xff] }
 0x141   : > { %607 = vrot.lane.b32.xlu1 %v602_v56, %s1701_s12  ;;  %625 = vrot.lane.b32.xlu0 %v621_v57, %s1700_s15  ;;  %v2231_v56 = vld [vmem:[#allocation2 + $0x51] sm:$0xff]  ;;  %v858_v57 = vstv %s1329_s16  ;;  %s2277_s16 = sld [smem:[#allocation10 + $0x103]] }
 0x145   : > { %627 = vrot.lane.b32.xlu1 %v622_v60, %s1700_s15  ;;  %669 = vrot.lane.b32.xlu0 %v665_v59, %s1700_s15  ;;  %v924_v59 = vmul.f32 %v922_v50, %v2231_v56  ;;  %v859_v60 = vmul.f32 %v858_v57, %v2208_v37 }
 0x149   : > { %671 = vrot.lane.b32.xlu1 %v666_v1, %s1700_s15  ;;  %703 = vrot.lane.b32.xlu0 %v699_v7, %s1700_s15  ;;  %v860_v1 = vmul.f32 %v858_v57, %v2216_v45  ;;  %v903_v7 = vmul.f32 %v902_v63, %v2212_v40 }
 0x14d   : > { %705 = vrot.lane.b32.xlu1 %v700_v12, %s1700_s15  ;;  %639 = vrot.lane.b32.xlu0 %v635_v13, %s1701_s12  ;;  %v904_v12 = vmul.f32 %v902_v63, %v2221_v47  ;;  %v937_v13 = vmul.f32 %v936_v11, %v2223_v49 }
 0x151   : > { %641 = vrot.lane.b32.xlu1 %v636_v15, %s1701_s12  ;;  %683 = vrot.lane.b32.xlu0 %v679_v16, %s1701_s12  ;;  %v956_v15 = vstv %s1338_s11  ;;  %v938_v16 = vmul.f32 %v936_v11, %v2231_v56  ;;  %s2284_s11 = sld [smem:[#allocation13 + $0x100]] }
 0x152   : > { %v957_v17 = vmul.f32 %v956_v15, %v2245_v14 }
 0x155   : > { %685 = vrot.lane.b32.xlu1 %v680_v18, %s1701_s12  ;;  %717 = vrot.lane.b32.xlu0 %v713_v19, %s1701_s12  ;;  %v2251_v18 = vld [vmem:[#allocation2 + $0x52] sm:$0xff]  ;;  %v970_v19 = vstv %s1339_s14  ;;  %s2286_s14 = sld [smem:[#allocation13 + $0x180]] }
 0x156   : > { %v958_v21 = vmul.f32 %v956_v15, %v2251_v18  ;;  %v971_v23 = vmul.f32 %v970_v19, %v2245_v14 }
 0x159   : > { %719 = vrot.lane.b32.xlu1 %v714_v24, %s1701_s12  ;;  %737 = vrot.lane.b32.xlu0 %v733_v25, %s1700_s15  ;;  %v972_v24 = vmul.f32 %v970_v19, %v2251_v18  ;;  %v548_v25 = vstv %s547_s18  ;;  %s2288_s18 = sld [smem:[#allocation15]] }
 0x15d   : > { %739 = vrot.lane.b32.xlu1 %v734_v29, %s1700_s15  ;;  %781 = vrot.lane.b32.xlu0 %v777_v27, %s1700_s15  ;;  %v549_v27 = vmul.f32 %v548_v25, %v2095_v33 }
 0x161   : > { %783 = vrot.lane.b32.xlu1 %v778_v2, %s1700_s15  ;;  %815 = vrot.lane.b32.xlu0 %v811_v30, %s1700_s15  ;;  %v550_v2 = vmul.f32 %v548_v25, %v2104_v38 }
 0x165   : > { %817 = vrot.lane.b32.xlu1 %v812_v31, %s1700_s15  ;;  %751 = vrot.lane.b32.xlu0 %v747_v6, %s1701_s12  ;;  %v582_v31 = vstv %s1305_s20  ;;  %s2290_s20 = sld [smem:[#allocation15 + $0x1]] }
 0x166   : > { %v584_v39 = vmul.f32 %v582_v31, %v2122_v48 }
 0x169   : > { %753 = vrot.lane.b32.xlu1 %v748_v10, %s1701_s12  ;;  %795 = vrot.lane.b32.xlu0 %v791_v32, %s1701_s12  ;;  %v583_v10 = vmul.f32 %v582_v31, %v2109_v42 }
 0x16d   : > { %797 = vrot.lane.b32.xlu1 %v792_v35, %s1701_s12  ;;  %829 = vrot.lane.b32.xlu0 %v825_v36, %s1701_s12 }
 0x171   : > { %831 = vrot.lane.b32.xlu1 %v826_v43, %s1701_s12  ;;  %849 = vrot.lane.b32.xlu0 %v845_v44, %s1700_s15  ;;  %v616_v43 = vstv %s1308_s9  ;;  %s2292_s9 = sld [smem:[#allocation12 + $0x1]] }
 0x172   : > { %v617_v50 = vmul.f32 %v616_v43, %v2129_v52 }
 0x175   : > { %851 = vrot.lane.b32.xlu1 %v846_v51, %s1700_s15  ;;  %893 = vrot.lane.b32.xlu0 %v889_v46, %s1700_s15 }
 0x179   : > { %895 = vrot.lane.b32.xlu1 %v890_v53, %s1700_s15  ;;  %927 = vrot.lane.b32.xlu0 %v923_v55, %s1700_s15 }
 0x17d   : > { %929 = vrot.lane.b32.xlu1 %v924_v59, %s1700_s15  ;;  %863 = vrot.lane.b32.xlu0 %v859_v60, %s1701_s12  ;;  %v618_v60 = vmul.f32 %v616_v43, %v2139_v58 }
 0x181   : > { %865 = vrot.lane.b32.xlu1 %v860_v1, %s1701_s12  ;;  %907 = vrot.lane.b32.xlu0 %v903_v7, %s1701_s12 }
 0x185   : > { %909 = vrot.lane.b32.xlu1 %v904_v12, %s1701_s12  ;;  %941 = vrot.lane.b32.xlu0 %v937_v13, %s1701_s12 }
 0x189   : > { %943 = vrot.lane.b32.xlu1 %v938_v16, %s1701_s12  ;;  %961 = vrot.lane.b32.xlu0 %v957_v17, %s1700_s15 }
 0x18d   : > { %963 = vrot.lane.b32.xlu1 %v958_v21, %s1700_s15  ;;  %975 = vrot.lane.b32.xlu0 %v971_v23, %s1701_s12  ;;  %s1311_s15 = sld [smem:[#allocation10 + $0x80]] }
 0x191   : > { %977 = vrot.lane.b32.xlu1 %v972_v24, %s1701_s12  ;;  %s1314_s12 = sld [smem:[#allocation10 + $0x83]] }
 0x193   : > { %v660_v55 = vstv %s1311_s15  ;;  %s2294_s15 = sld [smem:[#allocation15 + $0x2]] }
 0x194   : > { %v661_v63 = vmul.f32 %v660_v55, %v2134_v54  ;;  %v662_v12 = vmul.f32 %v660_v55, %v2145_v61 }
 0x197   : > { %v694_v21 = vstv %s1314_s12  ;;  %s2297_s12 = sld [smem:[#allocation15 + $0x3]] }
 0x198   : > { %v695_v54 = vmul.f32 %v694_v21, %v2147_v62  ;;  %v652_v62 = vstv %s2270_s30  ;;  %s2299_s30 = sld [smem:[#allocation13 + $0x1]] }
 0x1a3   : > { %v558_v3 = vpop.permute.xlu0 %557 }
 0x1a4   : > { %v563_v29 = vadd.f32 %v558_v3, %v549_v27 }
 0x1a7   : > { %v560_v30 = vpop.permute.xlu1 %559  ;;  %v572_v4 = vpop.permute.xlu0 %571 }
 0x1a8   : > { %v564_v6 = vadd.f32 %v560_v30, %v550_v2  ;;  %v577_v9 = vadd.f32 %v572_v4, %v563_v29  ;;  %v696_v2 = vmul.f32 %v694_v21, %v2153_v8  ;;  %v1052_v21 = vstv %s2294_s15  ;;  %s2383_s15 = sld [smem:[#allocation13 + $0x83]] }
 0x1ab   : > { %v574_v32 = vpop.permute.xlu1 %573  ;;  %v592_v34 = vpop.permute.xlu0 %591 }
 0x1ac   : > { %v578_v35 = vadd.f32 %v574_v32, %v564_v6  ;;  %v597_v36 = vadd.f32 %v592_v34, %v583_v10 }
 0x1af   : > { %v594_v33 = vpop.permute.xlu1 %593  ;;  %v606_v41 = vpop.permute.xlu0 %605 }
 0x1b0   : > { %v598_v44 = vadd.f32 %v594_v33, %v584_v39  ;;  %v611_v38 = vadd.f32 %v606_v41, %v597_v36  ;;  %v728_v33 = vstv %s2273_s13  ;;  %s2308_s13 = sld [smem:[#allocation13 + $0x181]] }
 0x1b1   : > { %v730_v55 = vmul.f32 %v728_v33, %v2177_v26 }
 0x1b2   : > { %v647_v46 = vadd.f32 %v611_v38, %v577_v9  ;;  %v729_v38 = vmul.f32 %v728_v33, %v2169_v20 }
 0x1b3   : > { %v608_v51 = vpop.permute.xlu1 %607  ;;  %v626_v53 = vpop.permute.xlu0 %625 }
 0x1b4   : > { %v612_v57 = vadd.f32 %v608_v51, %v598_v44  ;;  %v631_v42 = vadd.f32 %v626_v53, %v617_v50  ;;  %v806_v50 = vstv %s2277_s16  ;;  %v996_v51 = vstv %s2280_s28  ;;  %s2349_s16 = sld [smem:[#allocation12 + $0x2]] }
 0x1b5   : > { %s2352_s28 = sld [smem:[#allocation13 + $0x2]] }
 0x1b6   : > { %v648_v59 = vadd.f32 %v612_v57, %v578_v35  ;;  %v1025_v57 = vstv %s2282_s29  ;;  %s2354_s29 = sld [smem:[#allocation13 + $0x82]] }
 0x1b7   : > { %v628_v1 = vpop.permute.xlu1 %627  ;;  %v670_v48 = vpop.permute.xlu0 %669 }
 0x1b8   : > { %v632_v7 = vadd.f32 %v628_v1, %v618_v60  ;;  %v675_v11 = vadd.f32 %v670_v48, %v661_v63  ;;  %v994_v63 = vstv %s2288_s18  ;;  %v807_v48 = vmul.f32 %v806_v50, %v2184_v28  ;;  %s2360_s18 = sld [smem:[#allocation10 + $0x186]] }
 0x1b9   : > { %v808_v28 = vmul.f32 %v806_v50, %v2192_v5 }
 0x1bb   : > { %v672_v13 = vpop.permute.xlu1 %671  ;;  %v704_v15 = vpop.permute.xlu0 %703 }
 0x1bc   : > { %v676_v52 = vadd.f32 %v672_v13, %v662_v12  ;;  %v709_v3 = vadd.f32 %v704_v15, %v695_v54  ;;  %v1023_v12 = vstv %s2290_s20  ;;  %v764_v13 = vstv %s2292_s9  ;;  %s2374_s20 = sld [smem:[#allocation12 + $0x3]] }
 0x1bd   : > { %s2381_s9 = sld [smem:[#allocation13 + $0x3]] }
 0x1bf   : > { %v706_v16 = vpop.permute.xlu1 %705  ;;  %v640_v17 = vpop.permute.xlu0 %639 }
 0x1c0   : > { %v645_v19 = vadd.f32 %v640_v17, %v631_v42  ;;  %v710_v31 = vadd.f32 %v706_v16, %v696_v2  ;;  %v1054_v42 = vstv %s2284_s11  ;;  %s2356_s11 = sld [smem:[#allocation13 + $0x102]] }
 0x1c2   : > { %v649_v23 = vadd.f32 %v647_v46, %v645_v19  ;;  %v772_v46 = vstv %s2275_s19  ;;  %s2347_s19 = sld [smem:[#allocation10 + $0x183]] }
 0x1c3   : > { %v642_v24 = vpop.permute.xlu1 %641  ;;  %v684_v25 = vpop.permute.xlu0 %683  ;;  %v773_v1 = vmul.f32 %v772_v46, %v2173_v22  ;;  %v774_v20 = vmul.f32 %v772_v46, %v2182_v0  ;;  %v1081_v22 = vstv %s2297_s12  ;;  %s2385_s12 = sld [smem:[#allocation13 + $0x103]] }
 0x1c4   : > { %v646_v58 = vadd.f32 %v642_v24, %v632_v7  ;;  %v689_v30 = vadd.f32 %v684_v25, %v675_v11  ;;  %v653_v39 = vadd.f32 %v652_v62, %v649_v23  ;;  %v1002_v24 = vstv %s2299_s30  ;;  %s2387_s30 = sld [smem:[#allocation13 + $0x183]] }
 0x1c5   : > { %v1031_v25 = vstv %s2301_s0  ;;  %s2328_s0 = sld [smem:[#allocation10 + $0x106]] }
 0x1c6   : > { %v650_v27 = vadd.f32 %v648_v59, %v646_v58  ;;  %v655_v44 = vmax.f32 %v653_v39, 0.0  ;;  %v1083_v59 = vstv %s2286_s14  ;;  %v1060_v58 = vstv %s2303_s1  ;;  %s1331_s1 = sld [smem:[#allocation10 + $0x180]]  ;;  %s2358_s14 = sld [smem:[#allocation13 + $0x182]] }
 0x1c7   : > { %v686_v61 = vpop.permute.xlu1 %685  ;;  %v718_v29 = vpop.permute.xlu0 %717 }
 0x1c8   : > { %v723_v4 = vadd.f32 %v718_v29, %v709_v3  ;;  %v690_v32 = vadd.f32 %v686_v61, %v676_v52  ;;  %v654_v53 = vadd.f32 %v652_v62, %v650_v27  ;;  %v997_v26 = vmul.f32 %v996_v51, %v655_v44 }
 0x1c9   : > { %v1026_v52 = vmul.f32 %v1025_v57, %v655_v44  ;;  %v1055_v16 = vmul.f32 %v1054_v42, %v655_v44  ;;  %v1084_v17 = vmul.f32 %v1083_v59, %v655_v44  ;;  %v1089_v61 = vstv %s2308_s13  ;;  %s1371_s13 = sshll.u32 %s1769_s8, 10 }
 0x1ca   : > { %v759_v6 = vadd.f32 %v723_v4, %v689_v30  ;;  %v656_v19 = vmax.f32 %v654_v53, 0.0  ;;  %v999_v3 = vadd.f32 %v997_v26, %v994_v63  ;;  %s2409_s8 = scalar_lea.hbm %s2466_s7, %s1371_s13 }
 0x1cb   : > { %v720_v9 = vpop.permute.xlu1 %719  ;;  %v738_v10 = vpop.permute.xlu0 %737  ;;  %v1028_v30 = vadd.f32 %v1026_v52, %v1023_v12  ;;  %v1057_v4 = vadd.f32 %v1055_v16, %v1052_v21 }
 0x1cc   : > { %v724_v34 = vadd.f32 %v720_v9, %v710_v31  ;;  %v743_v60 = vadd.f32 %v738_v10, %v729_v38  ;;  %v1086_v31 = vadd.f32 %v1084_v17, %v1081_v22  ;;  %v998_v9 = vmul.f32 %v996_v51, %v656_v19 }
 0x1cd   : > { %v1027_v10 = vmul.f32 %v1025_v57, %v656_v19 }
 0x1ce   : > { %v760_v8 = vadd.f32 %v724_v34, %v690_v32  ;;  %v1056_v32 = vmul.f32 %v1054_v42, %v656_v19 }
 0x1cf   : > { %v740_v35 = vpop.permute.xlu1 %739  ;;  %v782_v36 = vpop.permute.xlu0 %781 }
 0x1d0   : > { %v744_v23 = vadd.f32 %v740_v35, %v730_v55  ;;  %v787_v35 = vadd.f32 %v782_v36, %v773_v1 }
 0x1d3   : > { %v784_v41 = vpop.permute.xlu1 %783  ;;  %v816_v43 = vpop.permute.xlu0 %815 }
 0x1d4   : > { %v788_v5 = vadd.f32 %v784_v41, %v774_v20  ;;  %v821_v39 = vadd.f32 %v816_v43, %v807_v48  ;;  %v1000_v41 = vadd.f32 %v998_v9, %v994_v63  ;;  %v1029_v43 = vadd.f32 %v1027_v10, %v1023_v12 }
 0x1d5   : > { %v1058_v48 = vadd.f32 %v1056_v32, %v1052_v21  ;;  %v840_v21 = vstv %s2328_s0  ;;  %s2493_s0 = sshll.u32 %s1936_s10, 6 }
 0x1d7   : > { %v818_v7 = vpop.permute.xlu1 %817  ;;  %v752_v11 = vpop.permute.xlu0 %751 }
 0x1d8   : > { %v757_v15 = vadd.f32 %v752_v11, %v743_v60  ;;  %v822_v55 = vadd.f32 %v818_v7, %v808_v28 }
 0x1da   : > { %v761_v0 = vadd.f32 %v759_v6, %v757_v15  ;;  %v1085_v6 = vmul.f32 %v1083_v59, %v656_v19 }
 0x1db   : > { %v754_v54 = vpop.permute.xlu1 %753  ;;  %v796_v27 = vpop.permute.xlu0 %795 }
 0x1dc   : > { %v765_v29 = vadd.f32 %v764_v13, %v761_v0  ;;  %v758_v2 = vadd.f32 %v754_v54, %v744_v23  ;;  %v801_v11 = vadd.f32 %v796_v27, %v787_v35  ;;  %v1087_v7 = vadd.f32 %v1085_v6, %v1081_v22 }
 0x1de   : > { %v767_v34 = vmax.f32 %v765_v29, 0.0  ;;  %v762_v62 = vadd.f32 %v760_v8, %v758_v2  ;;  %v842_v29 = vmul.f32 %v840_v21, %v2216_v45  ;;  %v884_v2 = vstv %s1331_s1  ;;  %s371_s1 = scalar_lea.vmem [#allocation16], %s2493_s0 }
 0x1df   : > { %v798_v33 = vpop.permute.xlu1 %797  ;;  %v830_v44 = vpop.permute.xlu0 %829  ;;  %v885_v10 = vmul.f32 %v884_v2, %v2212_v40  ;;  %v1008_v45 = vstv %s2352_s28 }
 0x1e0   : > { %v1003_v38 = vmul.f32 %v1002_v24, %v767_v34  ;;  %v1032_v46 = vmul.f32 %v1031_v25, %v767_v34  ;;  %v1061_v50 = vmul.f32 %v1060_v58, %v767_v34  ;;  %v1090_v53 = vmul.f32 %v1089_v61, %v767_v34 }
 0x1e1   : > { %v766_v60 = vadd.f32 %v764_v13, %v762_v62  ;;  %v835_v26 = vadd.f32 %v830_v44, %v821_v39  ;;  %v802_v13 = vadd.f32 %v798_v33, %v788_v5  ;;  %v886_v62 = vmul.f32 %v884_v2, %v2221_v47 }
 0x1e2   : > { %v2330_v51 = vadd.f32 %v1003_v38, %v999_v3  ;;  %v2332_v57 = vadd.f32 %v1032_v46, %v1028_v30  ;;  %v2334_v8 = vadd.f32 %v1061_v50, %v1057_v4  ;;  %v2336_v36 = vadd.f32 %v1090_v53, %v1086_v31 }
 0x1e3   : > { %v768_v42 = vmax.f32 %v766_v60, 0.0  ;;  %v871_v59 = vadd.f32 %v835_v26, %v801_v11  ;;  %v832_v1 = vpop.permute.xlu1 %831  ;;  %v850_v20 = vpop.permute.xlu0 %849  ;;  %v918_v30 = vstv %s2347_s19  ;;  %v876_v4 = vstv %s2349_s16  ;;  %s1123_s19 = sshll.u32 %s371_s1, 4  ;;  %s2411_s19 = int_to_ptr.vmem [resolvable:$true] %s1123_s19 }
 0x1e4   : > { %v836_v15 = vadd.f32 %v832_v1, %v822_v55  ;;  %v919_v6 = vmul.f32 %v918_v30, %v2223_v49  ;;  %v1037_v39 = vstv %s2354_s29  ;;  %v1066_v33 = vstv %s2356_s11  ;;  %s1110_s29 = scalar_lea.sflag [#allocation5], %s1936_s10  ;;  %s1605_s11 = scalar_lea.vmem %s2411_s19, 1024 }
 0x1e5   : > { %v1004_v52 = vmul.f32 %v1002_v24, %v768_v42  ;;  %v1033_v16 = vmul.f32 %v1031_v25, %v768_v42  ;;  %v1062_v17 = vmul.f32 %v1060_v58, %v768_v42  ;;  %v1091_v19 = vmul.f32 %v1089_v61, %v768_v42  ;;  %p1606_p11 = scmp.ne.s32.totalorder %s2411_s19, %s1605_s11 }
 0x1e6   : > { %v872_v23 = vadd.f32 %v836_v15, %v802_v13  ;;  %v841_v25 = vmul.f32 %v840_v21, %v2208_v37  ;;  %v1095_v44 = vstv %s2358_s14  ;;  %v952_v50 = vstv %s2360_s18  ;;  %s1702_s14 = smov [#allocation16]  }
 0x1e7   : > { %v2338_v0 = vadd.f32 %v1004_v52, %v1000_v41  ;;  %v2340_v28 = vadd.f32 %v1033_v16, %v1029_v43  ;;  %v2342_v63 = vadd.f32 %v1062_v17, %v1058_v48  ;;  %v2344_v12 = vadd.f32 %v1091_v19, %v1087_v7  ;;  %v852_v54 = vpop.permute.xlu1 %851  ;;  %v894_v27 = vpop.permute.xlu0 %893  ;;  %p1607_p3 = pnand %p1606_p11, %p2494_p12  ;;  %s1609_s18 = sshll.u32 %s1702_s14, 4  ;;  %s1610_s18 = int_to_ptr.vmem [resolvable:$false] %s1609_s18 }
 0x1e8   : > { %v855_v58 = vadd.f32 %v850_v20, %v841_v25  ;;  %v856_v31 = vadd.f32 %v852_v54, %v842_v29  ;;  %v899_v53 = vadd.f32 %v894_v27, %v885_v10  ;;  %v920_v40 = vmul.f32 %v918_v30, %v2231_v56  ;;  %p1612_p13 = scmp.lt.s32.totalorder %s2411_s19, %s1610_s18 }
 0x1e9   : > { %v953_v54 = vmul.f32 %v952_v50, %v2245_v14  ;;  %v988_v2 = vstv %s2374_s20  ;;  %v1043_v10 = vstv %s2383_s15  ;;  %p1608_p4 = pneg %p1607_p3  ;;  %s1611_s20 = scalar_lea.vmem %s1610_s18, 2048 }
 0x1ea   : > { %p1613_p8 = scmp.lt.s32.totalorder %s1611_s20, %s1605_s11 }
 0x1eb   : > { %v896_v22 = vpop.permute.xlu1 %895  ;;  %v928_v24 = vpop.permute.xlu0 %927 }
 0x1ec   : > { %v900_v55 = vadd.f32 %v896_v22, %v886_v62  ;;  %v933_v60 = vadd.f32 %v928_v24, %v919_v6  ;;  %p1614_p7 = por %p1613_p8, %p1612_p13 }
 0x1ee   : > { %p1615_p9 = pnand %p1614_p7, %p1608_p4 }
 0x1ef   : > { %v930_v3 = vpop.permute.xlu1 %929  ;;  %v864_v61 = vpop.permute.xlu0 %863 }
 0x1f0   : > { %v869_v37 = vadd.f32 %v864_v61, %v855_v58  ;;  %v934_v42 = vadd.f32 %v930_v3, %v920_v40  ;;  %v954_v61 = vmul.f32 %v952_v50, %v2251_v18 }
 0x1f2   : > { %v873_v9 = vadd.f32 %v871_v59, %v869_v37 }
 0x1f3   : > { %v866_v32 = vpop.permute.xlu1 %865  ;;  %v908_v34 = vpop.permute.xlu0 %907 }
 0x1f4   : > { %v877_v35 = vadd.f32 %v876_v4, %v873_v9  ;;  %v870_v5 = vadd.f32 %v866_v32, %v856_v31  ;;  %v913_v1 = vadd.f32 %v908_v34, %v899_v53  ;;  %v1101_v32 = vstv %s2387_s30 }
 0x1f6   : > { %v879_v38 = vmax.f32 %v877_v35, 0.0  ;;  %v874_v46 = vadd.f32 %v872_v23, %v870_v5 }
 0x1f7   : > { %v910_v11 = vpop.permute.xlu1 %909  ;;  %v942_v26 = vpop.permute.xlu0 %941 }
 0x1f8   : > { %v1009_v41 = vmul.f32 %v1008_v45, %v879_v38  ;;  %v1038_v47 = vmul.f32 %v1037_v39, %v879_v38  ;;  %v1067_v43 = vmul.f32 %v1066_v33, %v879_v38  ;;  %v1096_v49 = vmul.f32 %v1095_v44, %v879_v38 }
 0x1f9   : > { %v878_v59 = vadd.f32 %v876_v4, %v874_v46  ;;  %v947_v20 = vadd.f32 %v942_v26, %v933_v60  ;;  %v914_v19 = vadd.f32 %v910_v11, %v900_v55 }
 0x1fa   : > { %v1011_v48 = vadd.f32 %v1009_v41, %v2330_v51  ;;  %v1040_v7 = vadd.f32 %v1038_v47, %v2332_v57  ;;  %v1069_v13 = vadd.f32 %v1067_v43, %v2334_v8  ;;  %v1098_v56 = vadd.f32 %v1096_v49, %v2336_v36 }
 0x1fb   : > { %v880_v15 = vmax.f32 %v878_v59, 0.0  ;;  %v983_v52 = vadd.f32 %v947_v20, %v913_v1  ;;  %v944_v16 = vpop.permute.xlu1 %943  ;;  %v962_v17 = vpop.permute.xlu0 %961 }
 0x1fc   : > { %v948_v23 = vadd.f32 %v944_v16, %v934_v42  ;;  %v967_v36 = vadd.f32 %v962_v17, %v953_v54 }
 0x1fd   : > { %v1010_v27 = vmul.f32 %v1008_v45, %v880_v15  ;;  %v1039_v51 = vmul.f32 %v1037_v39, %v880_v15  ;;  %v1068_v57 = vmul.f32 %v1066_v33, %v880_v15  ;;  %v1097_v21 = vmul.f32 %v1095_v44, %v880_v15 }
 0x1fe   : > { %v984_v8 = vadd.f32 %v948_v23, %v914_v19 }
 0x1ff   : > { %v1012_v22 = vadd.f32 %v1010_v27, %v2338_v0  ;;  %v1041_v14 = vadd.f32 %v1039_v51, %v2340_v28  ;;  %v1070_v24 = vadd.f32 %v1068_v57, %v2342_v63  ;;  %v1099_v25 = vadd.f32 %v1097_v21, %v2344_v12  ;;  %v964_v58 = vpop.permute.xlu1 %963  ;;  %v976_v3 = vpop.permute.xlu0 %975 }
 0x200   : > { %v981_v29 = vadd.f32 %v976_v3, %v967_v36  ;;  %v968_v37 = vadd.f32 %v964_v58, %v954_v61  ;;  %v1014_v0 = vstv %s2381_s9  ;;  %v1072_v28 = vstv %s2385_s12 }
 0x202   : > { %v985_v30 = vadd.f32 %v983_v52, %v981_v29 }
 0x203   : > { %v978_v4 = vpop.permute.xlu1 %977 }
 0x204   : > { %v989_v31 = vadd.f32 %v988_v2, %v985_v30  ;;  %v982_v9 = vadd.f32 %v978_v4, %v968_v37 }
 0x206   : > { %v991_v63 = vmax.f32 %v989_v31, 0.0  ;;  %v986_v34 = vadd.f32 %v984_v8, %v982_v9 }
 0x208   : > { %v1015_v12 = vmul.f32 %v1014_v0, %v991_v63  ;;  %v1044_v62 = vmul.f32 %v1043_v10, %v991_v63  ;;  %v1073_v6 = vmul.f32 %v1072_v28, %v991_v63  ;;  %v1102_v35 = vmul.f32 %v1101_v32, %v991_v63 }
 0x209   : > { %v990_v18 = vadd.f32 %v988_v2, %v986_v34 }
 0x20a   : > { %v1017_v5 = vadd.f32 %v1015_v12, %v1011_v48  ;;  %v1046_v45 = vadd.f32 %v1044_v62, %v1040_v7  ;;  %v1075_v39 = vadd.f32 %v1073_v6, %v1069_v13  ;;  %v1104_v33 = vadd.f32 %v1102_v35, %v1098_v56 }
 0x20b   : > { %v992_v44 = vmax.f32 %v990_v18, 0.0 }
 0x20c   : > { %1020 = vst.msk [vmem:[%s371_s1] sm:$0xff] %vm1019_vm3, %v1017_v5  ;;  %1349 = vst.msk [vmem:[%s371_s1 + $0x10] sm:$0xff] %vm1019_vm3, %v1046_v45 }
 0x20d   : > { %1356 = vst.msk [vmem:[%s371_s1 + $0x20] sm:$0xff] %vm1019_vm3, %v1075_v39  ;;  %1363 = vst.msk [vmem:[%s371_s1 + $0x30] sm:$0xff] %vm1019_vm3, %v1104_v33  ;;  %v1016_v38 = vmul.f32 %v1014_v0, %v992_v44  ;;  %v1045_v46 = vmul.f32 %v1043_v10, %v992_v44  ;;  %v1074_v50 = vmul.f32 %v1072_v28, %v992_v44 }
 0x20e   : > { %v1103_v53 = vmul.f32 %v1101_v32, %v992_v44 }
 0x20f   : > { %v1018_v55 = vadd.f32 %v1016_v38, %v1012_v22  ;;  %v1047_v60 = vadd.f32 %v1045_v46, %v1041_v14  ;;  %v1076_v40 = vadd.f32 %v1074_v50, %v1070_v24 }
 0x210   : > { %v1105_v11 = vadd.f32 %v1103_v53, %v1099_v25 }
 0x211   : > { %1021 = vst.msk [vmem:[%s371_s1 + $0x8] sm:$0xff] %vm1019_vm3, %v1018_v55  ;;  %1350 = vst.msk [vmem:[%s371_s1 + $0x18] sm:$0xff] %vm1019_vm3, %v1047_v60 }
 0x212   : > { %1357 = vst.msk [vmem:[%s371_s1 + $0x28] sm:$0xff] %vm1019_vm3, %v1076_v40  ;;  %1364 = vst.msk [vmem:[%s371_s1 + $0x38] sm:$0xff] %vm1019_vm3, %v1105_v11 }
 0x213   : > { %1618 = shalt.err (!%p1615_p9)
}
 0x214   : > { %s1619_s9 = scalar_lea.hbm %s2409_s8, 1024  ;;  %s1623_s30 = scalar_lea.hbm %s2466_s7, 2048 }
 0x215   : > { %p1620_p10 = scmp.ne.s32.totalorder %s2409_s8, %s1619_s9  ;;  %p1624_p2 = scmp.lt.u32.totalorder %s2409_s8, %s2466_s7 }
 0x216   : > { %p1625_p6 = scmp.lt.u32.totalorder %s1623_s30, %s1619_s9  ;;  %p1627_p11 = scmp.lt.u32.totalorder %s1619_s9, %s2409_s8 }
 0x217   : > { %p1621_p1 = pnand %p1620_p10, %p2494_p12 }
 0x218   : > { %p1626_p5 = por %p1625_p6, %p1624_p2 }
 0x219   : > { %p1622_p0 = pneg %p1621_p1 }
 0x21a   : > { %p1628_p3 = por %p1627_p11, %p1626_p5 }
 0x21c   : > { %p1629_p4 = pnand %p1628_p3, %p1622_p0 }
 0x21e   : > { %1632 = shalt.err (!%p1629_p4)
}
 0x21f   : > { %s1703_s1 = smov 128   ;;  %s1704_s16 = smov 8  }
 0x220   : > { %1398 = dma.vmem_to_hbm [thread:$0]  (%p2494_p12), %s2411_s19, 1024, %s2409_s8, %s1110_s29, %s1703_s1, %s1703_s1, %s1704_s16  }
 0x221 PF: > { %s1138_s28 = sand.u32 1, %s1675_s24   ;;  %p2495_p13 = scmp.ne.s32.totalorder %s2481_s23, 0 }
 0x222   : > { %p2496_p8 = scmp.ge.s32.totalorder %s1687_s27, 2  ;;  %s1139_s11 = scalar_lea.sflag [#allocation5], %s1138_s28 }
 0x224   : > { %p1424_p7 = pnand %p2496_p8, %p2495_p13 }
 0x226   : > { %1670 = dma.done.wait (!%p1424_p7), %s1139_s11, 1024  }
 0x227   : > { %1672 = vsyncadd (!%p1424_p7), %s1139_s11, 4294966272  ;;  %p24_p9 = scmp.ge.s32.totalorder %s1857_s21, 4   ;;  %s2497_s24 = smov %s1679_s25 }
 0x228   : > { %s2498_s25 = smov %s1683_s26  ;;  %s2499_s26 = smov %s1868_s17 }
 0x229   : > { %s2500_s27 = smov %s1857_s21  ;;  %26 = sbr.rel (!%p24_p9) target bundleno = 12 (0xc), region = 128 }
 0x230   :  { %1144 = vsyncpa [#allocation4], 1 }
 0x231   :  { %1146 = vsyncpa [#allocation4 + $0x1], 1 }
 0x232   :  { %1147 = vsyncpa [#allocation5], 1 }
 0x233   :  { %1149 = vsyncpa [#allocation5 + $0x1], 1 }
 0x234   :  { %1150 = vsyncpa [#allocation6], 1 }
 0x235   :  { %1152 = vsyncpa [#allocation6 + $0x1], 1 }
 0x236   :  { %1153 = vsyncpa [#allocation7], 1 }
 0x237   :  { %1155 = vsyncpa [#allocation7 + $0x1], 1 }
 0x238   :  { %1156 = vsyncpa [#allocation11], 1 }
 0x239   :  { %1157 = vsyncpa [#allocation14], 1 }

</bundles_post_ra>
